<compile_context>
chip_gen: v7x
topology: tpu7x:2x2x1
jax: 0.10.0
libtpu: 0.0.40
codegen_flags: <defaults>
</compile_context>

<pallas_src>
import jax
import jax.numpy as jnp
from jax.experimental import pallas as pl
from jax.experimental.pallas import tpu as pltpu


def _round_up(x, m):
    return (x + m - 1) // m * m


def conve_kernel(a_ref, r_ref, cj_ref, w0_ref, w1_ref, cb_ref,
                 w1t_ref, t3_ref, o_ref):
    # Streams arrive in bf16; upcast once, keep all math in f32.
    a = a_ref[...].astype(jnp.float32)          # [tb, E]  h[row]
    r = r_ref[...].astype(jnp.float32)          # [tb, E]  g[rel]

    # conv(2,1) + bn1 as block-diagonal matmuls (constants pre-folded):
    #   feat[b, oc*E + w] = s1*w0[oc]*a[b,w] + s1*w1[oc]*r[b,w]
    #                       + conv_b[oc] + t1*(w0[oc] + w1[oc])
    feat = (jnp.dot(a, w0_ref[...], preferred_element_type=jnp.float32)
            + jnp.dot(r, w1_ref[...], preferred_element_type=jnp.float32)
            + cb_ref[...])
    feat = jnp.maximum(feat, 0.0)               # ReLU  [tb, OC*E]

    # fc1 + bn3 (eval) folded:  y = relu(feat @ (W^T * s3) + (b1*s3 + t3))
    y = jnp.dot(feat, w1t_ref[...], preferred_element_type=jnp.float32)
    y = jnp.maximum(y + t3_ref[...], 0.0)       # [tb, E]

    # score = sum(y * c_j, dim=1, keepdims=True)
    cj = cj_ref[...].astype(jnp.float32)        # [tb, E]  h[col]
    o_ref[...] = jnp.sum(y * cj, axis=-1, keepdims=True)


def conve_forward(h, g, edge_idx, edge_type, params, *, tb=512):
    eps = 1e-5
    E = h.shape[1]
    oc = params["conv_w"].shape[0]

    # ---- gathers: bf16 streams halve HBM traffic for the [B, E] arrays ----
    # TODO(synk): move these gathers in-kernel (scalar-prefetch indices with
    # VMEM-resident tables or a manual DMA gather) to avoid materializing
    # a/r/cj in HBM at all; skipped here to keep lowering risk-free.
    row, col = edge_idx[0], edge_idx[1]
    hb = h.astype(jnp.bfloat16)
    gb = g.astype(jnp.bfloat16)
    a = hb[row]                                  # [B, E]
    r = gb[edge_type]                            # [B, E]
    cj = hb[col]                                 # [B, E]
    B = a.shape[0]

    # ---- eval-mode constant folding (exact, f32) ----
    # bn1 (C=1): scalar affine.
    s1 = params["bn1_gamma"] / jnp.sqrt(params["bn1_rv"] + eps)
    t1 = params["bn1_beta"] - params["bn1_rm"] * s1

    # conv weight [OC,1,2,1] -> per-plane taps, as block-diagonal [E, OC*E]
    # matrices (OC-major flatten, matching torch's h.view(B, -1)).
    cw = params["conv_w"].reshape(oc, 2).astype(jnp.float32)
    eye = jnp.eye(E, dtype=jnp.float32)
    w0m = (s1 * cw[None, :, 0, None] * eye[:, None, :]).reshape(E, oc * E)
    w1m = (s1 * cw[None, :, 1, None] * eye[:, None, :]).reshape(E, oc * E)
    cb = params["conv_b"] + t1 * (cw[:, 0] + cw[:, 1])            # [OC]
    cbe = jnp.broadcast_to(cb[:, None], (oc, E)).reshape(1, oc * E)

    # fc1 (torch Linear: x @ W.T + b) with bn3 (eval) folded in.
    s3 = params["bn3_gamma"] / jnp.sqrt(params["bn3_rv"] + eps)   # [E]
    t3 = params["bn3_beta"] - params["bn3_rm"] * s3               # [E]
    w1t = params["fc1_w"].T.astype(jnp.float32) * s3[None, :]     # [OC*E, E]
    t3p = (params["fc1_b"] * s3 + t3).reshape(1, E)

    # ---- pad B to a multiple of the batch tile ----
    tb = max(8, min(tb, _round_up(B, 8)))
    B_pad = _round_up(B, tb)
    if B_pad != B:
        pad = ((0, B_pad - B), (0, 0))
        a = jnp.pad(a, pad)
        r = jnp.pad(r, pad)
        cj = jnp.pad(cj, pad)

    fixed = lambda i: (0, 0)
    cost = pl.CostEstimate(
        flops=2 * B_pad * (2 * E * oc * E + oc * E * E) + 6 * B_pad * oc * E,
        transcendentals=0,
        bytes_accessed=3 * B_pad * E * 2 + B_pad * 4
                       + (2 * E * oc * E + oc * E * E + oc * E + E) * 4,
    )

    out = pl.pallas_call(
        conve_kernel,
        out_shape=jax.ShapeDtypeStruct((B_pad, 1), jnp.float32),
        grid_spec=pltpu.PrefetchScalarGridSpec(
            num_scalar_prefetch=0,
            grid=(B_pad // tb,),
            in_specs=[
                pl.BlockSpec((tb, E), lambda i: (i, 0)),   # a  = h[row]   (bf16)
                pl.BlockSpec((tb, E), lambda i: (i, 0)),   # r  = g[rel]   (bf16)
                pl.BlockSpec((tb, E), lambda i: (i, 0)),   # cj = h[col]   (bf16)
                pl.BlockSpec((E, oc * E), fixed),          # conv tap 0 (block-diag, bn1 folded)
                pl.BlockSpec((E, oc * E), fixed),          # conv tap 1 (block-diag, bn1 folded)
                pl.BlockSpec((1, oc * E), fixed),          # conv bias  (bn1 shift folded)
                pl.BlockSpec((oc * E, E), fixed),          # fc1 W^T * s3
                pl.BlockSpec((1, E), fixed),               # b1*s3 + t3
            ],
            out_specs=pl.BlockSpec((tb, 1), lambda i: (i, 0)),
        ),
        compiler_params=pltpu.CompilerParams(
            dimension_semantics=("parallel",),
            vmem_limit_bytes=32 * 1024 * 1024),
        cost_estimate=cost,
    )(a, r, cj, w0m, w1m, cbe, w1t, t3p)
    return out[:B]


def conve_ref(h, g, edge_idx, edge_type, params):
    """Pure-JAX f32 reference matching the PyTorch forward (eval mode)."""
    eps = 1e-5
    row, col = edge_idx[0], edge_idx[1]
    a = h[row]
    r = g[edge_type]
    cj = h[col]
    oc = params["conv_w"].shape[0]
    s1 = params["bn1_gamma"] / jnp.sqrt(params["bn1_rv"] + eps)
    t1 = params["bn1_beta"] - params["bn1_rm"] * s1
    a_n = a * s1 + t1
    r_n = r * s1 + t1
    cw = params["conv_w"].reshape(oc, 2)
    conv = (a_n[:, None, :] * cw[None, :, 0, None]
            + r_n[:, None, :] * cw[None, :, 1, None]
            + params["conv_b"][None, :, None])            # [B, OC, E]
    feat = jnp.maximum(conv, 0.0).reshape(a.shape[0], -1)
    y = feat @ params["fc1_w"].T + params["fc1_b"]
    s3 = params["bn3_gamma"] / jnp.sqrt(params["bn3_rv"] + eps)
    t3 = params["bn3_beta"] - params["bn3_rm"] * s3
    y = jnp.maximum(y * s3 + t3, 0.0)
    return jnp.sum(y * cj, axis=1, keepdims=True)


if __name__ == "__main__":
    E, OC = 32, 4
    N_NODES, N_RELS, N_EDGES = 64, 11, 1000   # exercises padding + 2 grid steps

    key = jax.random.PRNGKey(0)
    k = jax.random.split(key, 12)
    h = jax.random.normal(k[0], (N_NODES, E), jnp.float32)
    g = jax.random.normal(k[1], (N_RELS, E), jnp.float32)
    edge_idx = jax.random.randint(k[2], (2, N_EDGES), 0, N_NODES)
    edge_type = jax.random.randint(k[3], (N_EDGES,), 0, N_RELS)

    params = dict(
        conv_w=0.1 * jax.random.normal(k[4], (OC, 1, 2, 1), jnp.float32),
        conv_b=0.05 * jax.random.normal(k[5], (OC,), jnp.float32),
        fc1_w=0.05 * jax.random.normal(k[6], (E, OC * E), jnp.float32),
        fc1_b=0.05 * jax.random.normal(k[7], (E,), jnp.float32),
        bn1_gamma=jnp.float32(1.1), bn1_beta=jnp.float32(0.05),
        bn1_rm=jnp.float32(0.02), bn1_rv=jnp.float32(0.9),
        bn3_gamma=1.0 + 0.1 * jax.random.normal(k[8], (E,), jnp.float32),
        bn3_beta=0.1 * jax.random.normal(k[9], (E,), jnp.float32),
        bn3_rm=0.1 * jax.random.normal(k[10], (E,), jnp.float32),
        bn3_rv=1.0 + 0.1 * jnp.abs(jax.random.normal(k[11], (E,), jnp.float32)),
    )

    out = conve_forward(h, g, edge_idx, edge_type, params, tb=512)
    jax.block_until_ready(out)
    assert out.shape == (N_EDGES, 1)

    # The kernel streams embeddings in bf16, so allow ~1e-2-level deviation
    # from the pure-f32 PyTorch-semantics reference.
    ref = conve_ref(h, g, edge_idx, edge_type, params)
    assert jnp.allclose(out, ref, atol=3e-2, rtol=3e-2), float(
        jnp.max(jnp.abs(out - ref)))

    # Tighter check against a same-precision (bf16-rounded embeddings, f32
    # math) reference: only weight-handling / accumulation order differ.
    ref_bf = conve_ref(h.astype(jnp.bfloat16).astype(jnp.float32),
                       g.astype(jnp.bfloat16).astype(jnp.float32),
                       edge_idx, edge_type, params)
    assert jnp.allclose(out, ref_bf, atol=1.5e-2, rtol=1.5e-2), float(
        jnp.max(jnp.abs(out - ref_bf)))

    print("KERNEL_OK")
</pallas_src>

<mosaic_0001>
module attributes {stable_mosaic.version = 11 : i64} {
  func.func @conve_kernel(%arg0: i32, %arg1: memref<512x32xbf16, #tpu.memory_space<vmem>>, %arg2: memref<512x32xbf16, #tpu.memory_space<vmem>>, %arg3: memref<512x32xbf16, #tpu.memory_space<vmem>>, %arg4: memref<32x128xf32, #tpu.memory_space<vmem>>, %arg5: memref<32x128xf32, #tpu.memory_space<vmem>>, %arg6: memref<1x128xf32, #tpu.memory_space<vmem>>, %arg7: memref<128x32xf32, #tpu.memory_space<vmem>>, %arg8: memref<1x32xf32, #tpu.memory_space<vmem>>, %arg9: memref<512x1xf32, #tpu.memory_space<vmem>>) attributes {dimension_semantics = [#tpu.dimension_semantics<parallel>], iteration_bounds = array<i64: 2>, scalar_prefetch = 0 : i64, scratch_operands = 0 : i64, tpu.core_type = #tpu.core_type<tc>, window_params = [{transform_indices = @transform_0, window_bounds = array<i64: 512, 32>}, {transform_indices = @transform_1, window_bounds = array<i64: 512, 32>}, {transform_indices = @transform_2, window_bounds = array<i64: 512, 32>}, {pipeline_mode = #tpu.pipeline_mode<synchronous>, transform_indices = @transform_3, window_bounds = array<i64: 32, 128>}, {pipeline_mode = #tpu.pipeline_mode<synchronous>, transform_indices = @transform_4, window_bounds = array<i64: 32, 128>}, {pipeline_mode = #tpu.pipeline_mode<synchronous>, transform_indices = @transform_5, window_bounds = array<i64: 1, 128>}, {pipeline_mode = #tpu.pipeline_mode<synchronous>, transform_indices = @transform_6, window_bounds = array<i64: 128, 32>}, {pipeline_mode = #tpu.pipeline_mode<synchronous>, transform_indices = @transform_7, window_bounds = array<i64: 1, 32>}, {transform_indices = @transform_8, window_bounds = array<i64: 512, 1>}]} {
    %c0 = arith.constant 0 : index
    %c0_0 = arith.constant 0 : index
    %0 = vector.load %arg1[%c0, %c0_0] : memref<512x32xbf16, #tpu.memory_space<vmem>>, vector<512x32xbf16>
    %1 = arith.extf %0 : vector<512x32xbf16> to vector<512x32xf32>
    %c0_1 = arith.constant 0 : index
    %c0_2 = arith.constant 0 : index
    %2 = vector.load %arg2[%c0_1, %c0_2] : memref<512x32xbf16, #tpu.memory_space<vmem>>, vector<512x32xbf16>
    %3 = arith.extf %2 : vector<512x32xbf16> to vector<512x32xf32>
    %c0_3 = arith.constant 0 : index
    %c0_4 = arith.constant 0 : index
    %4 = vector.load %arg4[%c0_3, %c0_4] : memref<32x128xf32, #tpu.memory_space<vmem>>, vector<32x128xf32>
    %cst = arith.constant dense<0.000000e+00> : vector<512x128xf32>
    %5 = tpu.matmul %1, %4, %cst {dimension_numbers = #tpu.dot_dimension_numbers<[1], [0], [0], [1], [0, 0, 1, 1], [], []>} : vector<512x32xf32>, vector<32x128xf32>, vector<512x128xf32> -> vector<512x128xf32>
    %c0_5 = arith.constant 0 : index
    %c0_6 = arith.constant 0 : index
    %6 = vector.load %arg5[%c0_5, %c0_6] : memref<32x128xf32, #tpu.memory_space<vmem>>, vector<32x128xf32>
    %cst_7 = arith.constant dense<0.000000e+00> : vector<512x128xf32>
    %7 = tpu.matmul %3, %6, %cst_7 {dimension_numbers = #tpu.dot_dimension_numbers<[1], [0], [0], [1], [0, 0, 1, 1], [], []>} : vector<512x32xf32>, vector<32x128xf32>, vector<512x128xf32> -> vector<512x128xf32>
    %8 = arith.addf %5, %7 : vector<512x128xf32>
    %c0_8 = arith.constant 0 : index
    %c0_9 = arith.constant 0 : index
    %9 = vector.load %arg6[%c0_8, %c0_9] : memref<1x128xf32, #tpu.memory_space<vmem>>, vector<1x128xf32>
    %10 = vector.broadcast %9 : vector<1x128xf32> to vector<512x128xf32>
    %11 = arith.addf %8, %10 : vector<512x128xf32>
    %cst_10 = arith.constant 0.000000e+00 : f32
    %12 = vector.broadcast %cst_10 : f32 to vector<512x128xf32>
    %13 = arith.maximumf %11, %12 : vector<512x128xf32>
    %c0_11 = arith.constant 0 : index
    %c0_12 = arith.constant 0 : index
    %14 = vector.load %arg7[%c0_11, %c0_12] : memref<128x32xf32, #tpu.memory_space<vmem>>, vector<128x32xf32>
    %cst_13 = arith.constant dense<0.000000e+00> : vector<512x32xf32>
    %15 = tpu.matmul %13, %14, %cst_13 {dimension_numbers = #tpu.dot_dimension_numbers<[1], [0], [0], [1], [0, 0, 1, 1], [], []>} : vector<512x128xf32>, vector<128x32xf32>, vector<512x32xf32> -> vector<512x32xf32>
    %c0_14 = arith.constant 0 : index
    %c0_15 = arith.constant 0 : index
    %16 = vector.load %arg8[%c0_14, %c0_15] : memref<1x32xf32, #tpu.memory_space<vmem>>, vector<1x32xf32>
    %17 = vector.broadcast %16 : vector<1x32xf32> to vector<512x32xf32>
    %18 = arith.addf %15, %17 : vector<512x32xf32>
    %cst_16 = arith.constant 0.000000e+00 : f32
    %19 = vector.broadcast %cst_16 : f32 to vector<512x32xf32>
    %20 = arith.maximumf %18, %19 : vector<512x32xf32>
    %c0_17 = arith.constant 0 : index
    %c0_18 = arith.constant 0 : index
    %21 = vector.load %arg3[%c0_17, %c0_18] : memref<512x32xbf16, #tpu.memory_space<vmem>>, vector<512x32xbf16>
    %22 = arith.extf %21 : vector<512x32xbf16> to vector<512x32xf32>
    %23 = arith.mulf %20, %22 : vector<512x32xf32>
    %cst_19 = arith.constant dense<0.000000e+00> : vector<512xf32>
    %24 = vector.multi_reduction <add>, %23, %cst_19 [1] : vector<512x32xf32> to vector<512xf32>
    %25 = vector.shape_cast %24 : vector<512xf32> to vector<512x1xf32>
    %c0_20 = arith.constant 0 : index
    %c0_21 = arith.constant 0 : index
    %26 = vector.load %arg9[%c0_20, %c0_21] : memref<512x1xf32, #tpu.memory_space<vmem>>, vector<512x1xf32>
    tpu.vector_store %arg9[%c0_20, %c0_21], %25 {strides = array<i32>} : memref<512x1xf32, #tpu.memory_space<vmem>>, vector<512x1xf32>,
    return
  }
  func.func @transform_0(%arg0: i32) -> (i32, i32) {
    %c0_i32 = arith.constant 0 : i32
    %c0_i32_0 = arith.constant 0 : i32
    return %arg0, %c0_i32 : i32, i32
  }
  func.func @transform_1(%arg0: i32) -> (i32, i32) {
    %c0_i32 = arith.constant 0 : i32
    %c0_i32_0 = arith.constant 0 : i32
    return %arg0, %c0_i32 : i32, i32
  }
  func.func @transform_2(%arg0: i32) -> (i32, i32) {
    %c0_i32 = arith.constant 0 : i32
    %c0_i32_0 = arith.constant 0 : i32
    return %arg0, %c0_i32 : i32, i32
  }
  func.func @transform_3(%arg0: i32) -> (i32, i32) {
    %c0_i32 = arith.constant 0 : i32
    %c0_i32_0 = arith.constant 0 : i32
    %c0_i32_1 = arith.constant 0 : i32
    return %c0_i32, %c0_i32_0 : i32, i32
  }
  func.func @transform_4(%arg0: i32) -> (i32, i32) {
    %c0_i32 = arith.constant 0 : i32
    %c0_i32_0 = arith.constant 0 : i32
    %c0_i32_1 = arith.constant 0 : i32
    return %c0_i32, %c0_i32_0 : i32, i32
  }
  func.func @transform_5(%arg0: i32) -> (i32, i32) {
    %c0_i32 = arith.constant 0 : i32
    %c0_i32_0 = arith.constant 0 : i32
    %c0_i32_1 = arith.constant 0 : i32
    return %c0_i32, %c0_i32_0 : i32, i32
  }
  func.func @transform_6(%arg0: i32) -> (i32, i32) {
    %c0_i32 = arith.constant 0 : i32
    %c0_i32_0 = arith.constant 0 : i32
    %c0_i32_1 = arith.constant 0 : i32
    return %c0_i32, %c0_i32_0 : i32, i32
  }
  func.func @transform_7(%arg0: i32) -> (i32, i32) {
    %c0_i32 = arith.constant 0 : i32
    %c0_i32_0 = arith.constant 0 : i32
    %c0_i32_1 = arith.constant 0 : i32
    return %c0_i32, %c0_i32_0 : i32, i32
  }
  func.func @transform_8(%arg0: i32) -> (i32, i32) {
    %c0_i32 = arith.constant 0 : i32
    %c0_i32_0 = arith.constant 0 : i32
    return %arg0, %c0_i32 : i32, i32
  }
}

</mosaic_0001>

<bundles_post_ra>
// kernel: tpu_custom_call.1
= control target key start
LH: loop header
LB: loop body
LE: loop exit
PB: predicated region body
PF: predicated region fallthrough
CT: control target
= control target key end

     0   :  { %s4259_s27 = smov 0   ;;  %s5021_s0 = inlined_call_operand.vmem [shape: bf16[1024,32], index: 0, kind: input, shape index: {}]   ;;  %s5022_s1 = inlined_call_operand.vmem [shape: bf16[1024,32], index: 1, kind: input, shape index: {}]   ;;  %s5023_s2 = inlined_call_operand.vmem [shape: bf16[1024,32], index: 2, kind: input, shape index: {}]   ;;  %s5024_s3 = inlined_call_operand.vmem [shape: f32[32,128], index: 3, kind: input, shape index: {}]   ;;  %s5025_s4 = inlined_call_operand.vmem [shape: f32[32,128], index: 4, kind: input, shape index: {}]   ;;  %s5026_s5 = inlined_call_operand.vmem [shape: f32[1,128], index: 5, kind: input, shape index: {}]   ;;  %s5027_s6 = inlined_call_operand.vmem [shape: f32[128,32], index: 6, kind: input, shape index: {}]   ;;  %s5028_s7 = inlined_call_operand.vmem [shape: f32[1,32], index: 7, kind: input, shape index: {}]   ;;  %s5029_s8 = inlined_call_operand.vmem [shape: f32[1024,1], index: 8, kind: output, shape index: {}]  }
   0x1 LB: > { %s2908_s28 = sadd.s32 4294967295, %s4212_s27   ;;  %p2912_p0 = scmp.ge.s32.totalorder %s4212_s27, 1  ;;  %s4212_s27 = sphi %s4259_s27, %s18_s27  }
   0x2   : > { %p285_p1 = scmp.lt.s32.totalorder %s4212_s27, 3 }
   0x4   : > { %p286_p2 = pnand %p2912_p0, %p285_p1 }
   0x5   : > { %v613_v0 = vld [vmem:[%s5025_s4] sm:$0xff] (!%p286_p2)  ;;  %v614_v1 = vld [vmem:[%s5025_s4 + $0x8] sm:$0xff] (!%p286_p2)  ;;  %v615_v2 = vld [vmem:[%s5025_s4 + $0x10] sm:$0xff] (!%p286_p2)  ;;  %s2913_s13 = sshll.u32 (!%p286_p2), %s2908_s28, 6  ;;  %vm617_vm0 = vcmask (!%p286_p2), 261120   ;;  %vm2763_vm1 = vcmask (!%p286_p2), 7168  }
   0x6   : > { %289 = sbr.rel (%p286_p2) target bundleno = 792 (0x318), region = 52  ;;  %v4082_v3 = vpack.c.bf16 (!%p286_p2), %v614_v1, %v613_v0  ;;  %v616_v4 = vld [vmem:[%s5025_s4 + $0x18] sm:$0xff] (!%p286_p2)  ;;  %p330_p3 = scmp.lt.s32.totalorder (!%p286_p2), %s2913_s13, 127  ;;  %v609_v6 = vld [vmem:[%s5024_s3] sm:$0xff] (!%p286_p2)  ;;  %v610_v7 = vld [vmem:[%s5024_s3 + $0x8] sm:$0xff] (!%p286_p2) }
   0x7   : > { %v4086_v5 = vpack.c.bf16 (!%p286_p2), %v616_v4, %v615_v2  ;;  %v4090_v8 = vpack.c.bf16 (!%p286_p2), %v610_v7, %v609_v6  ;;  %v611_v9 = vld [vmem:[%s5024_s3 + $0x10] sm:$0xff] (!%p286_p2)  ;;  %v612_v10 = vld [vmem:[%s5024_s3 + $0x18] sm:$0xff] (!%p286_p2) }
   0x8   : > { %4083 = vmatprep.subr.bf16.mxu0 (!%p286_p2), %v4082_v3  ;;  %4130 = vmatprep.subr.bf16.mxu1 (!%p286_p2), %v4082_v3  ;;  %v4094_v17 = vpack.c.bf16 (!%p286_p2), %v612_v10, %v611_v9 }
   0x9   : > { %4085 = vmatpush3.bf16.msra.mxu0 (!%p286_p2), %v4082_v3  ;;  %4132 = vmatpush3.bf16.msra.mxu1 (!%p286_p2), %v4082_v3 }
   0xa   : > { %4087 = vmatprep.subr.bf16.mxu0 (!%p286_p2), %v4086_v5  ;;  %4131 = vmatprep.subr.bf16.mxu1 (!%p286_p2), %v4086_v5 }
   0xd   : > { %s5031_s13 = smov (!%p330_p3, %s2913_s13), 127  ;;  %4089 = vmatpush3.bf16.msra.mxu0 %v4086_v5  ;;  %4133 = vmatpush3.bf16.msra.mxu1 %v4086_v5 }
   0xe   : > { %s4288_s20 = sshll.u32 %s5031_s13, 2  ;;  %4091 = vmatprep.subr.bf16.mxu0 %v4090_v8 }
   0xf   : > { %s4294_s23 = scalar_lea.vmem %s5022_s1, %s4288_s20  ;;  %s4380_s9 = scalar_lea.vmem %s5021_s0, %s4288_s20 }
  0x10   : > { %v3182_v11 = vld [vmem:[%s4294_s23] sm:$0xff]   ;;  %v3468_v12 = vld [vmem:[%s4294_s23 + $0x8] sm:$0xff]   ;;  %v3469_v16 = vld [vmem:[%s4294_s23 + $0x10] sm:$0xff]   ;;  %s4717_s30 = scalar_lea.vmem %s5023_s2, %s4288_s20  ;;  %s2920_s20 = sshll.u32 %s5031_s13, 3 }
  0x11   : > { %v3183_v13 = vunpack.c.l.bf16 %v3182_v11  ;;  %v3184_v14 = vunpack.c.h.bf16 %v3182_v11  ;;  %v3187_v15 = vunpack.c.l.bf16 %v3468_v12  ;;  %v3188_v18 = vunpack.c.h.bf16 %v3468_v12  ;;  %v3470_v20 = vld [vmem:[%s4294_s23 + $0x18] sm:$0xff]   ;;  %v3471_v23 = vld [vmem:[%s4294_s23 + $0x20] sm:$0xff]   ;;  %v3472_v26 = vld [vmem:[%s4294_s23 + $0x28] sm:$0xff]   ;;  %s4888_s15 = scalar_lea.vmem %s5029_s8, %s2920_s20 }
  0x12   : > { %v3191_v19 = vunpack.c.l.bf16 %v3469_v16  ;;  %v3192_v21 = vunpack.c.h.bf16 %v3469_v16  ;;  %v3195_v22 = vunpack.c.l.bf16 %v3470_v20  ;;  %v3196_v24 = vunpack.c.h.bf16 %v3470_v20  ;;  %v3483_v27 = vld [vmem:[%s4294_s23 + $0x80] sm:$0xff]   ;;  %v3484_v28 = vld [vmem:[%s4294_s23 + $0x88] sm:$0xff]   ;;  %v3473_v33 = vld [vmem:[%s4294_s23 + $0x30] sm:$0xff]  }
  0x13   : > { %3754 = vmatprep.mubr.msk.f32.mxu0 %vm617_vm0, %v3183_v13  ;;  %v3199_v25 = vunpack.c.l.bf16 %v3471_v23  ;;  %v3200_v29 = vunpack.c.h.bf16 %v3471_v23  ;;  %v3203_v30 = vunpack.c.l.bf16 %v3472_v26  ;;  %v3247_v31 = vunpack.c.l.bf16 %v3483_v27  ;;  %v3485_v35 = vld [vmem:[%s4294_s23 + $0x90] sm:$0xff]   ;;  %v3474_v40 = vld [vmem:[%s4294_s23 + $0x38] sm:$0xff]   ;;  %v3475_v46 = vld [vmem:[%s4294_s23 + $0x40] sm:$0xff]  }
  0x14   : > { %3755 = vmatmul.mubr.msk.f32.vlgmr.msra.gmra.mrb[0].mxu0 %vm617_vm0, %v3184_v14  ;;  %v3248_v32 = vunpack.c.h.bf16 %v3483_v27  ;;  %v3251_v34 = vunpack.c.l.bf16 %v3484_v28  ;;  %v3204_v36 = vunpack.c.h.bf16 %v3472_v26  ;;  %v3252_v37 = vunpack.c.h.bf16 %v3484_v28  ;;  %v3486_v41 = vld [vmem:[%s4294_s23 + $0x98] sm:$0xff]   ;;  %v3487_v47 = vld [vmem:[%s4294_s23 + $0xa0] sm:$0xff]   ;;  %v3476_v52 = vld [vmem:[%s4294_s23 + $0x48] sm:$0xff]  }
  0x15   : > { %4093 = vmatpush3.bf16.msra.mxu0 %v4090_v8  ;;  %3757 = vmatprep.mubr.msk.f32.mxu0 %vm617_vm0, %v3187_v15  ;;  %v3207_v38 = vunpack.c.l.bf16 %v3473_v33  ;;  %v3255_v39 = vunpack.c.l.bf16 %v3485_v35  ;;  %v3208_v42 = vunpack.c.h.bf16 %v3473_v33  ;;  %v3256_v43 = vunpack.c.h.bf16 %v3485_v35  ;;  %v3488_v53 = vld [vmem:[%s4294_s23 + $0xa8] sm:$0xff]   ;;  %v3477_v58 = vld [vmem:[%s4294_s23 + $0x50] sm:$0xff]   ;;  %v3478_v0 = vld [vmem:[%s4294_s23 + $0x58] sm:$0xff]  }
  0x16   : > { %4095 = vmatprep.subr.bf16.mxu0 %v4094_v17  ;;  %3802 = vmatprep.mubr.msk.f32.mxu1 %vm617_vm0, %v3247_v31  ;;  %v3211_v44 = vunpack.c.l.bf16 %v3474_v40  ;;  %v3259_v45 = vunpack.c.l.bf16 %v3486_v41  ;;  %v3212_v48 = vunpack.c.h.bf16 %v3474_v40  ;;  %v3260_v49 = vunpack.c.h.bf16 %v3486_v41  ;;  %v3489_v59 = vld [vmem:[%s4294_s23 + $0xb0] sm:$0xff]   ;;  %v3490_v1 = vld [vmem:[%s4294_s23 + $0xb8] sm:$0xff]   ;;  %v3479_v6 = vld [vmem:[%s4294_s23 + $0x60] sm:$0xff]  }
  0x17   : > { %3803 = vmatmul.mubr.msk.f32.vlgmr.msra.gmra.mrb[0].mxu1 %vm617_vm0, %v3248_v32  ;;  %v3215_v50 = vunpack.c.l.bf16 %v3475_v46  ;;  %v3263_v51 = vunpack.c.l.bf16 %v3487_v47  ;;  %v3216_v54 = vunpack.c.h.bf16 %v3475_v46  ;;  %v3264_v55 = vunpack.c.h.bf16 %v3487_v47  ;;  %v3491_v7 = vld [vmem:[%s4294_s23 + $0xc0] sm:$0xff]   ;;  %v3480_v12 = vld [vmem:[%s4294_s23 + $0x68] sm:$0xff]   ;;  %v1910_v46 = vld [vmem:[%s5027_s6 + $0x18] sm:$0xff] }
  0x18   : > { %3758 = vmatmul.mubr.msk.f32.gmra.mrb[2].mxu0 %vm617_vm0, %v3188_v18  ;;  %3805 = vmatprep.mubr.msk.f32.mxu1 %vm617_vm0, %v3251_v34  ;;  %v3219_v56 = vunpack.c.l.bf16 %v3476_v52  ;;  %v3267_v57 = vunpack.c.l.bf16 %v3488_v53  ;;  %v3220_v60 = vunpack.c.h.bf16 %v3476_v52  ;;  %v3268_v61 = vunpack.c.h.bf16 %v3488_v53  ;;  %v3492_v13 = vld [vmem:[%s4294_s23 + $0xc8] sm:$0xff]   ;;  %v3481_v18 = vld [vmem:[%s4294_s23 + $0x70] sm:$0xff]   ;;  %v3495_v31 = vld [vmem:[%s4294_s23 + $0xe0] sm:$0xff]  }
  0x19   : > { %3760 = vmatprep.mubr.msk.f32.mxu0 %vm617_vm0, %v3191_v19  ;;  %4097 = vmatpush3.bf16.msra.mxu0 %v4094_v17  ;;  %v3223_v62 = vunpack.c.l.bf16 %v3477_v58  ;;  %v3271_v63 = vunpack.c.l.bf16 %v3489_v59  ;;  %v3224_v2 = vunpack.c.h.bf16 %v3477_v58  ;;  %v3272_v3 = vunpack.c.h.bf16 %v3489_v59  ;;  %v3493_v19 = vld [vmem:[%s4294_s23 + $0xd0] sm:$0xff]   ;;  %v1907_v40 = vld [vmem:[%s5027_s6] sm:$0xff]  ;;  %v1908_v41 = vld [vmem:[%s5027_s6 + $0x8] sm:$0xff] }
  0x1a   : > { %v3227_v4 = vunpack.c.l.bf16 %v3478_v0  ;;  %v3275_v5 = vunpack.c.l.bf16 %v3490_v1  ;;  %v3228_v8 = vunpack.c.h.bf16 %v3478_v0  ;;  %v3276_v9 = vunpack.c.h.bf16 %v3490_v1  ;;  %v3438_v47 = vld [vmem:[%s4380_s9 + $0x10] sm:$0xff]   ;;  %v1911_v52 = vld [vmem:[%s5027_s6 + $0x20] sm:$0xff]  ;;  %v1912_v53 = vld [vmem:[%s5027_s6 + $0x28] sm:$0xff] }
  0x1b   : > { %3806 = vmatmul.mubr.msk.f32.gmra.mrb[2].mxu1 %vm617_vm0, %v3252_v37  ;;  %v3231_v10 = vunpack.c.l.bf16 %v3479_v6  ;;  %v3279_v11 = vunpack.c.l.bf16 %v3491_v7  ;;  %v3232_v14 = vunpack.c.h.bf16 %v3479_v6  ;;  %v3280_v15 = vunpack.c.h.bf16 %v3491_v7  ;;  %v3496_v37 = vld [vmem:[%s4294_s23 + $0xe8] sm:$0xff]   ;;  %v3440_v1 = vld [vmem:[%s4380_s9 + $0x20] sm:$0xff]  }
  0x1c   : > { %3761 = vmatmul.mubr.msk.f32.gmra.mrb[4].mxu0 %vm617_vm0, %v3192_v21  ;;  %3808 = vmatprep.mubr.msk.f32.mxu1 %vm617_vm0, %v3255_v39  ;;  %v3235_v16 = vunpack.c.l.bf16 %v3480_v12  ;;  %v3283_v17 = vunpack.c.l.bf16 %v3492_v13  ;;  %v3236_v20 = vunpack.c.h.bf16 %v3480_v12  ;;  %v3284_v21 = vunpack.c.h.bf16 %v3492_v13  ;;  %v1916_v6 = vld [vmem:[%s5027_s6 + $0x48] sm:$0xff]  ;;  %v1918_v12 = vld [vmem:[%s5027_s6 + $0x58] sm:$0xff] }
  0x1d   : > { %3763 = vmatprep.mubr.msk.f32.mxu0 %vm617_vm0, %v3195_v22  ;;  %v3239_v22 = vunpack.c.l.bf16 %v3481_v18  ;;  %v3287_v23 = vunpack.c.l.bf16 %v3493_v19  ;;  %v3240_v26 = vunpack.c.h.bf16 %v3481_v18  ;;  %v3288_v27 = vunpack.c.h.bf16 %v3493_v19  ;;  %v1920_v18 = vld [vmem:[%s5027_s6 + $0x68] sm:$0xff] }
  0x1e   : > { %v3295_v35 = vunpack.c.l.bf16 %v3495_v31  ;;  %v3296_v39 = vunpack.c.h.bf16 %v3495_v31  ;;  %v4106_v58 = vpack.c.bf16 %v1912_v53, %v1911_v52  ;;  %v3064_v59 = vunpack.c.h.bf16 %v3438_v47 }
  0x1f   : > { %3809 = vmatmul.mubr.msk.f32.gmra.mrb[4].mxu1 %vm617_vm0, %v3256_v43  ;;  %v3071_v7 = vunpack.c.l.bf16 %v3440_v1 }
  0x20   : > { %3764 = vmatmul.mubr.msk.f32.gmra.mrb[6].mxu0 %vm617_vm0, %v3196_v24  ;;  %3811 = vmatprep.mubr.msk.f32.mxu1 %vm617_vm0, %v3259_v45  ;;  %v3482_v24 = vld [vmem:[%s4294_s23 + $0x78] sm:$0xff]   ;;  %v4098_v45 = vpack.c.bf16 %v1908_v41, %v1907_v40 }
  0x21   : > { %3766 = vmatprep.mubr.msk.f32.mxu0 %vm617_vm0, %v3199_v25  ;;  %v3494_v25 = vld [vmem:[%s4294_s23 + $0xd8] sm:$0xff]   ;;  %v3243_v28 = vunpack.c.l.bf16 %v3482_v24  ;;  %v3244_v32 = vunpack.c.h.bf16 %v3482_v24 }
  0x22   : > { %v3292_v33 = vunpack.c.h.bf16 %v3494_v25  ;;  %4099 = vmatprep.subr.bf16.mxu1 %v4098_v45  ;;  %v1922_v24 = vld [vmem:[%s5027_s6 + $0x78] sm:$0xff] }
  0x23   : > { %3812 = vmatmul.mubr.msk.f32.gmra.mrb[6].mxu1 %vm617_vm0, %v3260_v49 }
  0x24   : > { %3767 = vmatmul.mubr.msk.f32.gmra.mrb[8].mxu0 %vm617_vm0, %v3200_v29  ;;  %3814 = vmatprep.mubr.msk.f32.mxu1 %vm617_vm0, %v3263_v51  ;;  %v3291_v29 = vunpack.c.l.bf16 %v3494_v25  ;;  %v3300_v51 = vunpack.c.h.bf16 %v3496_v37 }
  0x25   : > { %3769 = vmatprep.mubr.msk.f32.mxu0 %vm617_vm0, %v3203_v30  ;;  %v3054_v30 = vld [vmem:[%s4380_s9] sm:$0xff]   ;;  %4101 = vmatpush3.bf16.msra.mxu1 %v4098_v45  ;;  %v3450_v45 = vld [vmem:[%s4380_s9 + $0x70] sm:$0xff]  }
  0x26   : > { %v3055_v34 = vunpack.c.l.bf16 %v3054_v30 }
  0x27   : > { %3815 = vmatmul.mubr.msk.f32.gmra.mrb[8].mxu1 %vm617_vm0, %v3264_v55 }
  0x28   : > { %3770 = vmatmul.mubr.msk.f32.gmra.mrb[10].mxu0 %vm617_vm0, %v3204_v36  ;;  %3817 = vmatprep.mubr.msk.f32.mxu1 %vm617_vm0, %v3267_v57  ;;  %v3437_v36 = vld [vmem:[%s4380_s9 + $0x8] sm:$0xff]   ;;  %v3498_v57 = vld [vmem:[%s4294_s23 + $0xf8] sm:$0xff]  }
  0x29   : > { %3772 = vmatprep.mubr.msk.f32.mxu0 %vm617_vm0, %v3207_v38  ;;  %v3056_v38 = vunpack.c.h.bf16 %v3054_v30  ;;  %v3059_v43 = vunpack.c.l.bf16 %v3437_v36  ;;  %v3307_v0 = vunpack.c.l.bf16 %v3498_v57  ;;  %v3445_v30 = vld [vmem:[%s4380_s9 + $0x48] sm:$0xff]  }
  0x2b   : > { %3818 = vmatmul.mubr.msk.f32.gmra.mrb[10].mxu1 %vm617_vm0, %v3268_v61  ;;  %v1913_v61 = vld [vmem:[%s5027_s6 + $0x30] sm:$0xff] }
  0x2c   : > { %3773 = vmatmul.mubr.msk.f32.gmra.mrb[12].mxu0 %vm617_vm0, %v3208_v42  ;;  %3820 = vmatprep.mubr.msk.f32.mxu1 %vm617_vm0, %v3271_v63  ;;  %v1909_v42 = vld [vmem:[%s5027_s6 + $0x10] sm:$0xff] }
  0x2d   : > { %3775 = vmatprep.mubr.msk.f32.mxu0 %vm617_vm0, %v3211_v44  ;;  %v3299_v44 = vunpack.c.l.bf16 %v3496_v37  ;;  %v4102_v49 = vpack.c.bf16 %v1910_v46, %v1909_v42  ;;  %v3449_v42 = vld [vmem:[%s4380_s9 + $0x68] sm:$0xff]  }
  0x2e   : > { %v3108_v46 = vunpack.c.h.bf16 %v3449_v42 }
  0x2f   : > { %3821 = vmatmul.mubr.msk.f32.gmra.mrb[12].mxu1 %vm617_vm0, %v3272_v3  ;;  %4103 = vmatprep.subr.bf16.mxu1 %v4102_v49 }
  0x30   : > { %3776 = vmatmul.mubr.msk.f32.gmra.mrb[14].mxu0 %vm617_vm0, %v3212_v48  ;;  %3823 = vmatprep.mubr.msk.f32.mxu1 %vm617_vm0, %v3275_v5  ;;  %v3497_v48 = vld [vmem:[%s4294_s23 + $0xf0] sm:$0xff]   ;;  %v1915_v5 = vld [vmem:[%s5027_s6 + $0x40] sm:$0xff] }
  0x31   : > { %3778 = vmatprep.mubr.msk.f32.mxu0 %vm617_vm0, %v3215_v50  ;;  %v3060_v50 = vunpack.c.h.bf16 %v3437_v36  ;;  %v3303_v55 = vunpack.c.l.bf16 %v3497_v48  ;;  %4105 = vmatpush3.bf16.msra.mxu1 %v4102_v49  ;;  %v3447_v36 = vld [vmem:[%s4380_s9 + $0x58] sm:$0xff]   ;;  %v3112_v49 = vunpack.c.h.bf16 %v3450_v45 }
  0x32   : > { %4107 = vmatprep.subr.bf16.mxu1 %v4106_v58  ;;  %v3100_v40 = vunpack.c.h.bf16 %v3447_v36 }
  0x33   : > { %3824 = vmatmul.mubr.msk.f32.gmra.mrb[14].mxu1 %vm617_vm0, %v3276_v9  ;;  %v4114_v9 = vpack.c.bf16 %v1916_v6, %v1915_v5  ;;  %v3458_v5 = vld [vmem:[%s4380_s9 + $0xb0] sm:$0xff]  }
  0x34   : > { %3779 = vmatmul.mubr.msk.f32.gmra.mrb[16].mxu0 %vm617_vm0, %v3216_v54  ;;  %3826 = vmatprep.mubr.msk.f32.mxu1 %vm617_vm0, %v3279_v11  ;;  %v3063_v54 = vunpack.c.l.bf16 %v3438_v47  ;;  %v1917_v11 = vld [vmem:[%s5027_s6 + $0x50] sm:$0xff]  ;;  %v3111_v47 = vunpack.c.l.bf16 %v3450_v45 }
  0x35   : > { %3781 = vmatprep.mubr.msk.f32.mxu0 %vm617_vm0, %v3219_v56  ;;  %v3439_v56 = vld [vmem:[%s4380_s9 + $0x18] sm:$0xff]   ;;  %4109 = vmatpush3.bf16.msra.mxu1 %v4106_v58 }
  0x36   : > { %v3067_v63 = vunpack.c.l.bf16 %v3439_v56  ;;  %v3068_v3 = vunpack.c.h.bf16 %v3439_v56 }
  0x37   : > { %3827 = vmatmul.mubr.msk.f32.gmra.mrb[16].mxu1 %vm617_vm0, %v3280_v15  ;;  %v4118_v15 = vpack.c.bf16 %v1918_v12, %v1917_v11  ;;  %v3460_v11 = vld [vmem:[%s4380_s9 + $0xc0] sm:$0xff]  }
  0x38   : > { %3782 = vmatmul.mubr.msk.f32.gmra.mrb[18].mxu0 %vm617_vm0, %v3220_v60  ;;  %3829 = vmatprep.mubr.msk.f32.mxu1 %vm617_vm0, %v3283_v17  ;;  %v3304_v60 = vunpack.c.h.bf16 %v3497_v48  ;;  %v1919_v17 = vld [vmem:[%s5027_s6 + $0x60] sm:$0xff]  ;;  %v3451_v48 = vld [vmem:[%s4380_s9 + $0x78] sm:$0xff]  }
  0x39   : > { %3784 = vmatprep.mubr.msk.f32.mxu0 %vm617_vm0, %v3223_v62  ;;  %v1914_v62 = vld [vmem:[%s5027_s6 + $0x38] sm:$0xff]  ;;  %v3116_v52 = vunpack.c.h.bf16 %v3451_v48 }
  0x3b   : > { %3830 = vmatmul.mubr.msk.f32.gmra.mrb[18].mxu1 %vm617_vm0, %v3284_v21  ;;  %v4122_v21 = vpack.c.bf16 %v1920_v18, %v1919_v17  ;;  %v3462_v17 = vld [vmem:[%s4380_s9 + $0xd0] sm:$0xff]  }
  0x3c   : > { %3785 = vmatmul.mubr.msk.f32.gmra.mrb[20].mxu0 %vm617_vm0, %v3224_v2  ;;  %3832 = vmatprep.mubr.msk.f32.mxu1 %vm617_vm0, %v3287_v23  ;;  %v4110_v2 = vpack.c.bf16 %v1914_v62, %v1913_v61  ;;  %v1921_v23 = vld [vmem:[%s5027_s6 + $0x70] sm:$0xff] }
  0x3d   : > { %3787 = vmatprep.mubr.msk.f32.mxu0 %vm617_vm0, %v3227_v4  ;;  %v3308_v4 = vunpack.c.h.bf16 %v3498_v57  ;;  %v3454_v57 = vld [vmem:[%s4380_s9 + $0x90] sm:$0xff]  }
  0x3e   : > { %4111 = vmatprep.subr.bf16.mxu1 %v4110_v2  ;;  %v3128_v61 = vunpack.c.h.bf16 %v3454_v57 }
  0x3f   : > { %3833 = vmatmul.mubr.msk.f32.gmra.mrb[20].mxu1 %vm617_vm0, %v3288_v27  ;;  %v4126_v27 = vpack.c.bf16 %v1922_v24, %v1921_v23  ;;  %v3464_v23 = vld [vmem:[%s4380_s9 + $0xe0] sm:$0xff]  }
  0x40   : > { %3788 = vmatmul.mubr.msk.f32.gmra.mrb[22].mxu0 %vm617_vm0, %v3228_v8  ;;  %3835 = vmatprep.mubr.msk.f32.mxu1 %vm617_vm0, %v3291_v29  ;;  %v3441_v8 = vld [vmem:[%s4380_s9 + $0x28] sm:$0xff]  }
  0x41   : > { %3790 = vmatprep.mubr.msk.f32.mxu0 %vm617_vm0, %v3231_v10  ;;  %v3072_v10 = vunpack.c.h.bf16 %v3440_v1  ;;  %v3075_v13 = vunpack.c.l.bf16 %v3441_v8  ;;  %4113 = vmatpush3.bf16.msra.mxu1 %v4110_v2  ;;  %v3457_v2 = vld [vmem:[%s4380_s9 + $0xa8] sm:$0xff]  }
  0x42   : > { %4115 = vmatprep.subr.bf16.mxu1 %v4114_v9  ;;  %v3140_v6 = vunpack.c.h.bf16 %v3457_v2 }
  0x43   : > { %3836 = vmatmul.mubr.msk.f32.gmra.mrb[22].mxu1 %vm617_vm0, %v3292_v33  ;;  %v3446_v33 = vld [vmem:[%s4380_s9 + $0x50] sm:$0xff]  }
  0x44   : > { %3791 = vmatmul.mubr.msk.f32.gmra.mrb[24].mxu0 %vm617_vm0, %v3232_v14  ;;  %3838 = vmatprep.mubr.msk.f32.mxu1 %vm617_vm0, %v3295_v35  ;;  %v3442_v14 = vld [vmem:[%s4380_s9 + $0x30] sm:$0xff]   ;;  %v3095_v35 = vunpack.c.l.bf16 %v3446_v33  ;;  %v3096_v37 = vunpack.c.h.bf16 %v3446_v33 }
  0x45   : > { %3793 = vmatprep.mubr.msk.f32.mxu0 %vm617_vm0, %v3235_v16  ;;  %v3076_v16 = vunpack.c.h.bf16 %v3441_v8  ;;  %v3079_v19 = vunpack.c.l.bf16 %v3442_v14  ;;  %4117 = vmatpush3.bf16.msra.mxu1 %v4114_v9  ;;  %v3459_v8 = vld [vmem:[%s4380_s9 + $0xb8] sm:$0xff]   ;;  %v3144_v9 = vunpack.c.h.bf16 %v3458_v5 }
  0x46   : > { %4119 = vmatprep.subr.bf16.mxu1 %v4118_v15  ;;  %v3148_v12 = vunpack.c.h.bf16 %v3459_v8 }
  0x47   : > { %3839 = vmatmul.mubr.msk.f32.gmra.mrb[24].mxu1 %vm617_vm0, %v3296_v39  ;;  %v3448_v39 = vld [vmem:[%s4380_s9 + $0x60] sm:$0xff]  }
  0x48   : > { %3794 = vmatmul.mubr.msk.f32.gmra.mrb[26].mxu0 %vm617_vm0, %v3236_v20  ;;  %3841 = vmatprep.mubr.msk.f32.mxu1 %vm617_vm0, %v3299_v44  ;;  %v3443_v20 = vld [vmem:[%s4380_s9 + $0x38] sm:$0xff]   ;;  %v3103_v41 = vunpack.c.l.bf16 %v3448_v39  ;;  %v3107_v44 = vunpack.c.l.bf16 %v3449_v42 }
  0x49   : > { %3796 = vmatprep.mubr.msk.f32.mxu0 %vm617_vm0, %v3239_v22  ;;  %v3080_v22 = vunpack.c.h.bf16 %v3442_v14  ;;  %v3083_v25 = vunpack.c.l.bf16 %v3443_v20  ;;  %4121 = vmatpush3.bf16.msra.mxu1 %v4118_v15  ;;  %v3461_v14 = vld [vmem:[%s4380_s9 + $0xc8] sm:$0xff]   ;;  %v3152_v15 = vunpack.c.h.bf16 %v3460_v11 }
  0x4a   : > { %4123 = vmatprep.subr.bf16.mxu1 %v4122_v21  ;;  %v3156_v18 = vunpack.c.h.bf16 %v3461_v14 }
  0x4b   : > { %3842 = vmatmul.mubr.msk.f32.gmra.mrb[26].mxu1 %vm617_vm0, %v3300_v51  ;;  %v3452_v51 = vld [vmem:[%s4380_s9 + $0x80] sm:$0xff]  }
  0x4c   : > { %3797 = vmatmul.mubr.msk.f32.gmra.mrb[28].mxu0 %vm617_vm0, %v3240_v26  ;;  %3844 = vmatprep.mubr.msk.f32.mxu1 %vm617_vm0, %v3303_v55  ;;  %v3444_v26 = vld [vmem:[%s4380_s9 + $0x40] sm:$0xff]   ;;  %v3119_v53 = vunpack.c.l.bf16 %v3452_v51  ;;  %v3120_v55 = vunpack.c.h.bf16 %v3452_v51 }
  0x4d   : > { %3799 = vmatprep.mubr.msk.f32.mxu0 %vm617_vm0, %v3243_v28  ;;  %v3084_v28 = vunpack.c.h.bf16 %v3443_v20  ;;  %v3087_v29 = vunpack.c.l.bf16 %v3444_v26  ;;  %4125 = vmatpush3.bf16.msra.mxu1 %v4122_v21  ;;  %v3088_v31 = vunpack.c.h.bf16 %v3444_v26  ;;  %v3463_v20 = vld [vmem:[%s4380_s9 + $0xd8] sm:$0xff]   ;;  %v3160_v21 = vunpack.c.h.bf16 %v3462_v17  ;;  %v3465_v26 = vld [vmem:[%s4380_s9 + $0xe8] sm:$0xff]  }
  0x4e   : > { %4127 = vmatprep.subr.bf16.mxu1 %v4126_v27  ;;  %v3164_v24 = vunpack.c.h.bf16 %v3463_v20 }
  0x4f   : > { %3845 = vmatmul.mubr.msk.f32.gmra.mrb[28].mxu1 %vm617_vm0, %v3304_v60  ;;  %v3455_v60 = vld [vmem:[%s4380_s9 + $0x98] sm:$0xff]  }
  0x50   : > { %3800 = vmatmul.mubr.msk.f32.gmra.mrb[30].mxu0 %vm617_vm0, %v3244_v32  ;;  %3847 = vmatprep.mubr.msk.f32.mxu1 %vm617_vm0, %v3307_v0  ;;  %v3091_v32 = vunpack.c.l.bf16 %v3445_v30  ;;  %v3131_v62 = vunpack.c.l.bf16 %v3455_v60  ;;  %v3132_v0 = vunpack.c.h.bf16 %v3455_v60  ;;  %v4599_v60 = vld [vmem:[%s5026_s5] ss:$0 sm:$0xff] }
  0x51   : > { %3858 = vmatprep.mubr.msk.f32.mxu0 %vm617_vm0, %v3055_v34  ;;  %4129 = vmatpush3.bf16.msra.mxu1 %v4126_v27  ;;  %v3092_v34 = vunpack.c.h.bf16 %v3445_v30  ;;  %v3168_v27 = vunpack.c.h.bf16 %v3464_v23  ;;  %v3172_v30 = vunpack.c.h.bf16 %v3465_v26 }
  0x53   : > { %3848 = vmatmul.mubr.msk.f32.gmra.mrb[30].mxu1 %vm617_vm0, %v3308_v4  ;;  %v3139_v4 = vunpack.c.l.bf16 %v3457_v2 }
  0x54   : > { %3859 = vmatmul.mubr.msk.f32.vlgmr.msra.gmra.mrb[0].mxu0 %vm617_vm0, %v3056_v38  ;;  %v3099_v38 = vunpack.c.l.bf16 %v3447_v36 }
  0x55   : > { %3861 = vmatprep.mubr.msk.f32.mxu0 %vm617_vm0, %v3059_v43  ;;  %v3104_v43 = vunpack.c.h.bf16 %v3448_v39 }
  0x58   : > { %3862 = vmatmul.mubr.msk.f32.gmra.mrb[2].mxu0 %vm617_vm0, %v3060_v50  ;;  %v3115_v50 = vunpack.c.l.bf16 %v3451_v48 }
  0x59   : > { %3864 = vmatprep.mubr.msk.f32.mxu0 %vm617_vm0, %v3063_v54  ;;  %v3453_v54 = vld [vmem:[%s4380_s9 + $0x88] sm:$0xff]  }
  0x5a   : > { %v3123_v56 = vunpack.c.l.bf16 %v3453_v54  ;;  %v3124_v58 = vunpack.c.h.bf16 %v3453_v54 }
  0x5c   : > { %3865 = vmatmul.mubr.msk.f32.gmra.mrb[4].mxu0 %vm617_vm0, %v3064_v59  ;;  %v3127_v59 = vunpack.c.l.bf16 %v3454_v57 }
  0x5d   : > { %3867 = vmatprep.mubr.msk.f32.mxu0 %vm617_vm0, %v3067_v63  ;;  %v3456_v63 = vld [vmem:[%s4380_s9 + $0xa0] sm:$0xff]  }
  0x5e   : > { %v3135_v1 = vunpack.c.l.bf16 %v3456_v63 }
  0x60   : > { %3868 = vmatmul.mubr.msk.f32.gmra.mrb[6].mxu0 %vm617_vm0, %v3068_v3  ;;  %v3136_v3 = vunpack.c.h.bf16 %v3456_v63 }
  0x61   : > { %3870 = vmatprep.mubr.msk.f32.mxu0 %vm617_vm0, %v3071_v7  ;;  %v3143_v7 = vunpack.c.l.bf16 %v3458_v5 }
  0x64   : > { %3871 = vmatmul.mubr.msk.f32.gmra.mrb[8].mxu0 %vm617_vm0, %v3072_v10  ;;  %v3147_v10 = vunpack.c.l.bf16 %v3459_v8 }
  0x65   : > { %3873 = vmatprep.mubr.msk.f32.mxu0 %vm617_vm0, %v3075_v13  ;;  %v3151_v13 = vunpack.c.l.bf16 %v3460_v11 }
  0x68   : > { %3874 = vmatmul.mubr.msk.f32.gmra.mrb[10].mxu0 %vm617_vm0, %v3076_v16  ;;  %v3155_v16 = vunpack.c.l.bf16 %v3461_v14 }
  0x69   : > { %3876 = vmatprep.mubr.msk.f32.mxu0 %vm617_vm0, %v3079_v19  ;;  %v3159_v19 = vunpack.c.l.bf16 %v3462_v17 }
  0x6c   : > { %3877 = vmatmul.mubr.msk.f32.gmra.mrb[12].mxu0 %vm617_vm0, %v3080_v22  ;;  %v3163_v22 = vunpack.c.l.bf16 %v3463_v20 }
  0x6d   : > { %3879 = vmatprep.mubr.msk.f32.mxu0 %vm617_vm0, %v3083_v25  ;;  %v3167_v25 = vunpack.c.l.bf16 %v3464_v23 }
  0x70   : > { %3880 = vmatmul.mubr.msk.f32.gmra.mrb[14].mxu0 %vm617_vm0, %v3084_v28  ;;  %v3171_v28 = vunpack.c.l.bf16 %v3465_v26 }
  0x71   : > { %3882 = vmatprep.mubr.msk.f32.mxu0 %vm617_vm0, %v3087_v29  ;;  %v3466_v29 = vld [vmem:[%s4380_s9 + $0xf0] sm:$0xff]  }
  0x72   : > { %v3176_v33 = vunpack.c.h.bf16 %v3466_v29 }
  0x74   : > { %3883 = vmatmul.mubr.msk.f32.gmra.mrb[16].mxu0 %vm617_vm0, %v3088_v31  ;;  %v3175_v31 = vunpack.c.l.bf16 %v3466_v29 }
  0x75   : > { %3885 = vmatprep.mubr.msk.f32.mxu0 %vm617_vm0, %v3091_v32  ;;  %v3467_v32 = vld [vmem:[%s4380_s9 + $0xf8] sm:$0xff]  }
  0x78   : > { %3886 = vmatmul.mubr.msk.f32.gmra.mrb[18].mxu0 %vm617_vm0, %v3092_v34  ;;  %v3179_v34 = vunpack.c.l.bf16 %v3467_v32 }
  0x79   : > { %3888 = vmatprep.mubr.msk.f32.mxu0 %vm617_vm0, %v3095_v35  ;;  %v3180_v35 = vunpack.c.h.bf16 %v3467_v32 }
  0x7c   : > { %3889 = vmatmul.mubr.msk.f32.gmra.mrb[20].mxu0 %vm617_vm0, %v3096_v37 }
  0x7d   : > { %3891 = vmatprep.mubr.msk.f32.mxu0 %vm617_vm0, %v3099_v38 }
  0x80   : > { %3892 = vmatmul.mubr.msk.f32.gmra.mrb[22].mxu0 %vm617_vm0, %v3100_v40 }
  0x81   : > { %3894 = vmatprep.mubr.msk.f32.mxu0 %vm617_vm0, %v3103_v41 }
  0x84   : > { %3895 = vmatmul.mubr.msk.f32.gmra.mrb[24].mxu0 %vm617_vm0, %v3104_v43 }
  0x85   : > { %3897 = vmatprep.mubr.msk.f32.mxu0 %vm617_vm0, %v3107_v44 }
  0x88   : > { %3898 = vmatmul.mubr.msk.f32.gmra.mrb[26].mxu0 %vm617_vm0, %v3108_v46 }
  0x89   : > { %3900 = vmatprep.mubr.msk.f32.mxu0 %vm617_vm0, %v3111_v47 }
  0x8c   : > { %3901 = vmatmul.mubr.msk.f32.gmra.mrb[28].mxu0 %vm617_vm0, %v3112_v49 }
  0x8d   : > { %3903 = vmatprep.mubr.msk.f32.mxu0 %vm617_vm0, %v3115_v50 }
  0x90   : > { %3904 = vmatmul.mubr.msk.f32.gmra.mrb[30].mxu0 %vm617_vm0, %v3116_v52 }
  0x91   : > { %3906 = vmatprep.mubr.msk.f32.mxu0 %vm617_vm0, %v3119_v53 }
  0x94   : > { %3907 = vmatmul.mubr.msk.f32.gmra.mrb[32].mxu0 %vm617_vm0, %v3120_v55 }
  0x95   : > { %3909 = vmatprep.mubr.msk.f32.mxu0 %vm617_vm0, %v3123_v56 }
  0x98   : > { %3910 = vmatmul.mubr.msk.f32.gmra.mrb[34].mxu0 %vm617_vm0, %v3124_v58 }
  0x99   : > { %3912 = vmatprep.mubr.msk.f32.mxu0 %vm617_vm0, %v3127_v59 }
  0x9c   : > { %3913 = vmatmul.mubr.msk.f32.gmra.mrb[36].mxu0 %vm617_vm0, %v3128_v61 }
  0x9d   : > { %3915 = vmatprep.mubr.msk.f32.mxu0 %vm617_vm0, %v3131_v62 }
  0xa0   : > { %3916 = vmatmul.mubr.msk.f32.gmra.mrb[38].mxu0 %vm617_vm0, %v3132_v0 }
  0xa1   : > { %3918 = vmatprep.mubr.msk.f32.mxu0 %vm617_vm0, %v3135_v1 }
  0xa4   : > { %3919 = vmatmul.mubr.msk.f32.gmra.mrb[40].mxu0 %vm617_vm0, %v3136_v3 }
  0xa5   : > { %3921 = vmatprep.mubr.msk.f32.mxu0 %vm617_vm0, %v3139_v4 }
  0xa8   : > { %3922 = vmatmul.mubr.msk.f32.gmra.mrb[42].mxu0 %vm617_vm0, %v3140_v6 }
  0xa9   : > { %3924 = vmatprep.mubr.msk.f32.mxu0 %vm617_vm0, %v3143_v7 }
  0xac   : > { %3925 = vmatmul.mubr.msk.f32.gmra.mrb[44].mxu0 %vm617_vm0, %v3144_v9 }
  0xad   : > { %3927 = vmatprep.mubr.msk.f32.mxu0 %vm617_vm0, %v3147_v10 }
  0xb0   : > { %3928 = vmatmul.mubr.msk.f32.gmra.mrb[46].mxu0 %vm617_vm0, %v3148_v12 }
  0xb1   : > { %3930 = vmatprep.mubr.msk.f32.mxu0 %vm617_vm0, %v3151_v13 }
  0xb4   : > { %3931 = vmatmul.mubr.msk.f32.gmra.mrb[48].mxu0 %vm617_vm0, %v3152_v15 }
  0xb5   : > { %3933 = vmatprep.mubr.msk.f32.mxu0 %vm617_vm0, %v3155_v16 }
  0xb8   : > { %3934 = vmatmul.mubr.msk.f32.gmra.mrb[50].mxu0 %vm617_vm0, %v3156_v18 }
  0xb9   : > { %3936 = vmatprep.mubr.msk.f32.mxu0 %vm617_vm0, %v3159_v19 }
  0xbc   : > { %3937 = vmatmul.mubr.msk.f32.gmra.mrb[52].mxu0 %vm617_vm0, %v3160_v21 }
  0xbd   : > { %3939 = vmatprep.mubr.msk.f32.mxu0 %vm617_vm0, %v3163_v22 }
  0xc0   : > { %3940 = vmatmul.mubr.msk.f32.gmra.mrb[54].mxu0 %vm617_vm0, %v3164_v24 }
  0xc1   : > { %3942 = vmatprep.mubr.msk.f32.mxu0 %vm617_vm0, %v3167_v25 }
  0xc4   : > { %3943 = vmatmul.mubr.msk.f32.gmra.mrb[56].mxu0 %vm617_vm0, %v3168_v27 }
  0xc5   : > { %3945 = vmatprep.mubr.msk.f32.mxu0 %vm617_vm0, %v3171_v28 }
  0xc8   : > { %3946 = vmatmul.mubr.msk.f32.gmra.mrb[58].mxu0 %vm617_vm0, %v3172_v30 }
  0xc9   : > { %3948 = vmatprep.mubr.msk.f32.mxu0 %vm617_vm0, %v3175_v31 }
  0xcc   : > { %3949 = vmatmul.mubr.msk.f32.gmra.mrb[60].mxu0 %vm617_vm0, %v3176_v33 }
  0xcd   : > { %3951 = vmatprep.mubr.msk.f32.mxu0 %vm617_vm0, %v3179_v34 }
  0xd0   : > { %3952 = vmatmul.mubr.msk.f32.gmra.mrb[62].mxu0 %vm617_vm0, %v3180_v35 }
  0xea   : > { %v4548_v36 = vpop.f32.mrb[0].mxu1 }
  0xeb   : > { %v4550_v37 = vpop.f32.mrb[1].mxu1 }
  0xee   : > { %v4552_v38 = vpop.f32.mrb[2].mxu1 }
  0xef   : > { %v4554_v39 = vpop.f32.mrb[3].mxu1 }
  0xf2   : > { %v4556_v40 = vpop.f32.mrb[4].mxu1 }
  0xf3   : > { %v4558_v41 = vpop.f32.mrb[5].mxu1 }
  0xf6   : > { %v4560_v42 = vpop.f32.mrb[6].mxu1 }
  0xf7   : > { %v4562_v43 = vpop.f32.mrb[7].mxu1 }
  0xfa   : > { %v4564_v44 = vpop.f32.mrb[8].mxu1 }
  0xfb   : > { %v4566_v45 = vpop.f32.mrb[9].mxu1 }
  0xfe   : > { %v4568_v46 = vpop.f32.mrb[10].mxu1 }
  0xff   : > { %v4570_v47 = vpop.f32.mrb[11].mxu1 }
 0x102   : > { %v4572_v48 = vpop.f32.mrb[12].mxu1 }
 0x103   : > { %v4574_v49 = vpop.f32.mrb[13].mxu1 }
 0x106   : > { %v4576_v50 = vpop.f32.mrb[14].mxu1 }
 0x107   : > { %v4578_v51 = vpop.f32.mrb[15].mxu1 }
 0x10a   : > { %v4580_v52 = vpop.f32.mrb[16].mxu1 }
 0x10b   : > { %v4582_v53 = vpop.f32.mrb[17].mxu1 }
 0x10e   : > { %v4584_v54 = vpop.f32.mrb[18].mxu1 }
 0x10f   : > { %v4586_v55 = vpop.f32.mrb[19].mxu1 }
 0x112   : > { %v4588_v56 = vpop.f32.mrb[20].mxu1 }
 0x113   : > { %v4590_v57 = vpop.f32.mrb[21].mxu1 }
 0x116   : > { %v4592_v58 = vpop.f32.mrb[22].mxu1 }
 0x117   : > { %v4594_v59 = vpop.f32.mrb[23].mxu1 }
 0x11a   : > { %v4601_v62 = vpop.f32.mrb[24].mxu1 }
 0x11b   : > { %v4604_v1 = vpop.f32.mrb[25].mxu1 }
 0x11e   : > { %v4607_v5 = vpop.f32.mrb[26].mxu1 }
 0x11f   : > { %v4610_v9 = vpop.f32.mrb[27].mxu1 }
 0x122   : > { %v4613_v13 = vpop.f32.mrb[28].mxu1 }
 0x123   : > { %v4616_v17 = vpop.f32.mrb[29].mxu1 }
 0x126   : > { %v4619_v21 = vpop.f32.mrb[30].mxu1 }
 0x127   : > { %v3860_v61 = vpop.f32.mrb[0].mxu0  ;;  %v4622_v25 = vpop.f32.mrb[31].mxu1 }
 0x128   : > { %v1780_v63 = vadd.f32 %v3860_v61, %v4599_v60  ;;  %v1453_v0 = vpop.f32.mrb[1].mxu0 }
 0x129   : > { %v1779_v2 = vadd.f32 %v4599_v60, %v1453_v0 }
 0x12a   : > { %v1844_v6 = vmax.f32 %v1780_v63, 0.0 }
 0x12b   : > { %v1843_v3 = vmax.f32 %v1779_v2, 0.0  ;;  %v3863_v4 = vpop.f32.mrb[2].mxu0 }
 0x12c   : > { %v1782_v7 = vadd.f32 %v3863_v4, %v4599_v60  ;;  %v1463_v8 = vpop.f32.mrb[3].mxu0 }
 0x12d   : > { %v1781_v10 = vadd.f32 %v4599_v60, %v1463_v8  ;;  %3986 = vmatprep.mubr.f32.mxu1 %v1843_v3 }
 0x12e   : > { %3987 = vmatmul.mubr.f32.vlgmr.msra.gmra.mrb[32].mxu1 %v1844_v6  ;;  %v1846_v14 = vmax.f32 %v1782_v7, 0.0 }
 0x12f   : > { %v1845_v11 = vmax.f32 %v1781_v10, 0.0  ;;  %v3866_v12 = vpop.f32.mrb[4].mxu0 }
 0x130   : > { %v1784_v15 = vadd.f32 %v3866_v12, %v4599_v60  ;;  %v1473_v16 = vpop.f32.mrb[5].mxu0 }
 0x131   : > { %v1783_v18 = vadd.f32 %v4599_v60, %v1473_v16  ;;  %3989 = vmatprep.mubr.f32.mxu1 %v1845_v11 }
 0x132   : > { %3990 = vmatmul.mubr.f32.gmra.mrb[34].mxu1 %v1846_v14  ;;  %v1848_v22 = vmax.f32 %v1784_v15, 0.0 }
 0x133   : > { %v1847_v19 = vmax.f32 %v1783_v18, 0.0  ;;  %v3869_v20 = vpop.f32.mrb[6].mxu0 }
 0x134   : > { %v1786_v23 = vadd.f32 %v3869_v20, %v4599_v60  ;;  %v1483_v24 = vpop.f32.mrb[7].mxu0 }
 0x135   : > { %v1785_v26 = vadd.f32 %v4599_v60, %v1483_v24  ;;  %3992 = vmatprep.mubr.f32.mxu1 %v1847_v19 }
 0x136   : > { %3993 = vmatmul.mubr.f32.gmra.mrb[36].mxu1 %v1848_v22  ;;  %v1850_v29 = vmax.f32 %v1786_v23, 0.0 }
 0x137   : > { %v1849_v27 = vmax.f32 %v1785_v26, 0.0  ;;  %v3872_v28 = vpop.f32.mrb[8].mxu0 }
 0x138   : > { %v1788_v30 = vadd.f32 %v3872_v28, %v4599_v60  ;;  %v1493_v31 = vpop.f32.mrb[9].mxu0 }
 0x139   : > { %v1787_v32 = vadd.f32 %v4599_v60, %v1493_v31  ;;  %3995 = vmatprep.mubr.f32.mxu1 %v1849_v27 }
 0x13a   : > { %3996 = vmatmul.mubr.f32.gmra.mrb[38].mxu1 %v1850_v29  ;;  %v1852_v35 = vmax.f32 %v1788_v30, 0.0 }
 0x13b   : > { %v1851_v33 = vmax.f32 %v1787_v32, 0.0  ;;  %v3875_v34 = vpop.f32.mrb[10].mxu0 }
 0x13c   : > { %v1790_v61 = vadd.f32 %v3875_v34, %v4599_v60  ;;  %v1503_v63 = vpop.f32.mrb[11].mxu0 }
 0x13d   : > { %v1789_v0 = vadd.f32 %v4599_v60, %v1503_v63  ;;  %3998 = vmatprep.mubr.f32.mxu1 %v1851_v33 }
 0x13e   : > { %3999 = vmatmul.mubr.f32.gmra.mrb[40].mxu1 %v1852_v35  ;;  %v1854_v4 = vmax.f32 %v1790_v61, 0.0 }
 0x13f   : > { %v1853_v2 = vmax.f32 %v1789_v0, 0.0  ;;  %v3878_v3 = vpop.f32.mrb[12].mxu0 }
 0x140   : > { %v1792_v6 = vadd.f32 %v3878_v3, %v4599_v60  ;;  %v1513_v7 = vpop.f32.mrb[13].mxu0 }
 0x141   : > { %v1791_v8 = vadd.f32 %v4599_v60, %v1513_v7  ;;  %4001 = vmatprep.mubr.f32.mxu1 %v1853_v2 }
 0x142   : > { %4002 = vmatmul.mubr.f32.gmra.mrb[42].mxu1 %v1854_v4  ;;  %v1856_v12 = vmax.f32 %v1792_v6, 0.0 }
 0x143   : > { %v1855_v10 = vmax.f32 %v1791_v8, 0.0  ;;  %v3881_v11 = vpop.f32.mrb[14].mxu0 }
 0x144   : > { %v1794_v14 = vadd.f32 %v3881_v11, %v4599_v60  ;;  %v1523_v15 = vpop.f32.mrb[15].mxu0 }
 0x145   : > { %v1793_v16 = vadd.f32 %v4599_v60, %v1523_v15  ;;  %4004 = vmatprep.mubr.f32.mxu1 %v1855_v10 }
 0x146   : > { %4005 = vmatmul.mubr.f32.gmra.mrb[44].mxu1 %v1856_v12  ;;  %v1858_v20 = vmax.f32 %v1794_v14, 0.0 }
 0x147   : > { %v1857_v18 = vmax.f32 %v1793_v16, 0.0  ;;  %v3884_v19 = vpop.f32.mrb[16].mxu0 }
 0x148   : > { %v1796_v22 = vadd.f32 %v3884_v19, %v4599_v60  ;;  %v1533_v23 = vpop.f32.mrb[17].mxu0 }
 0x149   : > { %v1795_v24 = vadd.f32 %v4599_v60, %v1533_v23  ;;  %4007 = vmatprep.mubr.f32.mxu1 %v1857_v18 }
 0x14a   : > { %4008 = vmatmul.mubr.f32.gmra.mrb[46].mxu1 %v1858_v20  ;;  %v1860_v28 = vmax.f32 %v1796_v22, 0.0 }
 0x14b   : > { %v1859_v26 = vmax.f32 %v1795_v24, 0.0  ;;  %v3887_v27 = vpop.f32.mrb[18].mxu0 }
 0x14c   : > { %v1798_v29 = vadd.f32 %v3887_v27, %v4599_v60  ;;  %v1543_v30 = vpop.f32.mrb[19].mxu0 }
 0x14d   : > { %v1797_v31 = vadd.f32 %v4599_v60, %v1543_v30  ;;  %4010 = vmatprep.mubr.f32.mxu1 %v1859_v26 }
 0x14e   : > { %4011 = vmatmul.mubr.f32.gmra.mrb[48].mxu1 %v1860_v28  ;;  %v1862_v34 = vmax.f32 %v1798_v29, 0.0 }
 0x14f   : > { %v1861_v32 = vmax.f32 %v1797_v31, 0.0  ;;  %v3890_v33 = vpop.f32.mrb[20].mxu0 }
 0x150   : > { %v1800_v35 = vadd.f32 %v3890_v33, %v4599_v60  ;;  %v1553_v61 = vpop.f32.mrb[21].mxu0 }
 0x151   : > { %v1799_v63 = vadd.f32 %v4599_v60, %v1553_v61  ;;  %4013 = vmatprep.mubr.f32.mxu1 %v1861_v32 }
 0x152   : > { %4014 = vmatmul.mubr.f32.gmra.mrb[50].mxu1 %v1862_v34  ;;  %v1864_v3 = vmax.f32 %v1800_v35, 0.0 }
 0x153   : > { %v1863_v0 = vmax.f32 %v1799_v63, 0.0  ;;  %v3893_v2 = vpop.f32.mrb[22].mxu0 }
 0x154   : > { %v1802_v4 = vadd.f32 %v3893_v2, %v4599_v60  ;;  %v1563_v6 = vpop.f32.mrb[23].mxu0 }
 0x155   : > { %v1801_v7 = vadd.f32 %v4599_v60, %v1563_v6  ;;  %4016 = vmatprep.mubr.f32.mxu1 %v1863_v0 }
 0x156   : > { %4017 = vmatmul.mubr.f32.gmra.mrb[52].mxu1 %v1864_v3  ;;  %v1866_v11 = vmax.f32 %v1802_v4, 0.0 }
 0x157   : > { %v1865_v8 = vmax.f32 %v1801_v7, 0.0  ;;  %v3896_v10 = vpop.f32.mrb[24].mxu0 }
 0x158   : > { %v1804_v12 = vadd.f32 %v3896_v10, %v4599_v60  ;;  %v1573_v14 = vpop.f32.mrb[25].mxu0 }
 0x159   : > { %v1803_v15 = vadd.f32 %v4599_v60, %v1573_v14  ;;  %4019 = vmatprep.mubr.f32.mxu1 %v1865_v8 }
 0x15a   : > { %4020 = vmatmul.mubr.f32.gmra.mrb[54].mxu1 %v1866_v11  ;;  %v1868_v19 = vmax.f32 %v1804_v12, 0.0 }
 0x15b   : > { %v1867_v16 = vmax.f32 %v1803_v15, 0.0  ;;  %v3899_v18 = vpop.f32.mrb[26].mxu0 }
 0x15c   : > { %v1806_v20 = vadd.f32 %v3899_v18, %v4599_v60  ;;  %v1583_v22 = vpop.f32.mrb[27].mxu0 }
 0x15d   : > { %v1805_v23 = vadd.f32 %v4599_v60, %v1583_v22  ;;  %4022 = vmatprep.mubr.f32.mxu1 %v1867_v16 }
 0x15e   : > { %4023 = vmatmul.mubr.f32.gmra.mrb[56].mxu1 %v1868_v19  ;;  %v1870_v27 = vmax.f32 %v1806_v20, 0.0 }
 0x15f   : > { %v1869_v24 = vmax.f32 %v1805_v23, 0.0  ;;  %v3902_v26 = vpop.f32.mrb[28].mxu0 }
 0x160   : > { %v1808_v28 = vadd.f32 %v3902_v26, %v4599_v60  ;;  %v1593_v29 = vpop.f32.mrb[29].mxu0 }
 0x161   : > { %v1807_v30 = vadd.f32 %v4599_v60, %v1593_v29  ;;  %4025 = vmatprep.mubr.f32.mxu1 %v1869_v24 }
 0x162   : > { %4026 = vmatmul.mubr.f32.gmra.mrb[58].mxu1 %v1870_v27  ;;  %v1872_v33 = vmax.f32 %v1808_v28, 0.0 }
 0x163   : > { %v1871_v31 = vmax.f32 %v1807_v30, 0.0  ;;  %v3905_v32 = vpop.f32.mrb[30].mxu0 }
 0x164   : > { %v1810_v34 = vadd.f32 %v3905_v32, %v4599_v60  ;;  %v1603_v35 = vpop.f32.mrb[31].mxu0 }
 0x165   : > { %v1809_v61 = vadd.f32 %v4599_v60, %v1603_v35  ;;  %4028 = vmatprep.mubr.f32.mxu1 %v1871_v31 }
 0x166   : > { %4029 = vmatmul.mubr.f32.gmra.mrb[60].mxu1 %v1872_v33  ;;  %v1874_v2 = vmax.f32 %v1810_v34, 0.0 }
 0x167   : > { %v1873_v63 = vmax.f32 %v1809_v61, 0.0  ;;  %v3908_v0 = vpop.f32.mrb[32].mxu0 }
 0x168   : > { %v1619_v3 = vadd.f32 %v3908_v0, %v4548_v36  ;;  %v1613_v4 = vpop.f32.mrb[33].mxu0 }
 0x169   : > { %v1614_v6 = vadd.f32 %v1613_v4, %v4550_v37  ;;  %4031 = vmatprep.mubr.f32.mxu1 %v1873_v63 }
 0x16a   : > { %v1812_v7 = vadd.f32 %v4599_v60, %v1619_v3  ;;  %4032 = vmatmul.mubr.f32.gmra.mrb[62].mxu1 %v1874_v2 }
 0x16b   : > { %v1811_v8 = vadd.f32 %v4599_v60, %v1614_v6  ;;  %v3911_v10 = vpop.f32.mrb[34].mxu0 }
 0x16c   : > { %v1876_v11 = vmax.f32 %v1812_v7, 0.0  ;;  %v1629_v12 = vadd.f32 %v3911_v10, %v4552_v38  ;;  %v1623_v14 = vpop.f32.mrb[35].mxu0 }
 0x16d   : > { %v1875_v15 = vmax.f32 %v1811_v8, 0.0  ;;  %v1624_v16 = vadd.f32 %v1623_v14, %v4554_v39 }
 0x16e   : > { %v1814_v18 = vadd.f32 %v4599_v60, %v1629_v12 }
 0x16f   : > { %v1813_v36 = vadd.f32 %v4599_v60, %v1624_v16  ;;  %v3914_v19 = vpop.f32.mrb[36].mxu0  ;;  %4034 = vmatprep.mubr.f32.mxu1 %v1875_v15 }
 0x170   : > { %v1878_v37 = vmax.f32 %v1814_v18, 0.0  ;;  %v1639_v20 = vadd.f32 %v3914_v19, %v4556_v40  ;;  %v1633_v22 = vpop.f32.mrb[37].mxu0  ;;  %4035 = vmatmul.mubr.f32.gmra.mrb[64].mxu1 %v1876_v11 }
 0x171   : > { %v1877_v23 = vmax.f32 %v1813_v36, 0.0  ;;  %v1634_v24 = vadd.f32 %v1633_v22, %v4558_v41 }
 0x172   : > { %v1816_v38 = vadd.f32 %v4599_v60, %v1639_v20 }
 0x173   : > { %v1815_v26 = vadd.f32 %v4599_v60, %v1634_v24  ;;  %v3917_v27 = vpop.f32.mrb[38].mxu0  ;;  %4037 = vmatprep.mubr.f32.mxu1 %v1877_v23 }
 0x174   : > { %v1880_v39 = vmax.f32 %v1816_v38, 0.0  ;;  %v1649_v28 = vadd.f32 %v3917_v27, %v4560_v42  ;;  %v1643_v29 = vpop.f32.mrb[39].mxu0  ;;  %4038 = vmatmul.mubr.f32.gmra.mrb[66].mxu1 %v1878_v37 }
 0x175   : > { %v1879_v30 = vmax.f32 %v1815_v26, 0.0  ;;  %v1644_v31 = vadd.f32 %v1643_v29, %v4562_v43 }
 0x176   : > { %v1818_v40 = vadd.f32 %v4599_v60, %v1649_v28 }
 0x177   : > { %v1817_v32 = vadd.f32 %v4599_v60, %v1644_v31  ;;  %v3920_v33 = vpop.f32.mrb[40].mxu0  ;;  %4040 = vmatprep.mubr.f32.mxu1 %v1879_v30 }
 0x178   : > { %v1882_v41 = vmax.f32 %v1818_v40, 0.0  ;;  %v1659_v34 = vadd.f32 %v3920_v33, %v4564_v44  ;;  %v1653_v35 = vpop.f32.mrb[41].mxu0  ;;  %4041 = vmatmul.mubr.f32.gmra.mrb[68].mxu1 %v1880_v39 }
 0x179   : > { %v1881_v61 = vmax.f32 %v1817_v32, 0.0  ;;  %v1654_v63 = vadd.f32 %v1653_v35, %v4566_v45 }
 0x17a   : > { %v1820_v42 = vadd.f32 %v4599_v60, %v1659_v34 }
 0x17b   : > { %v1819_v0 = vadd.f32 %v4599_v60, %v1654_v63  ;;  %v3923_v2 = vpop.f32.mrb[42].mxu0  ;;  %4043 = vmatprep.mubr.f32.mxu1 %v1881_v61 }
 0x17c   : > { %v1884_v43 = vmax.f32 %v1820_v42, 0.0  ;;  %v1669_v3 = vadd.f32 %v3923_v2, %v4568_v46  ;;  %v1663_v4 = vpop.f32.mrb[43].mxu0  ;;  %4044 = vmatmul.mubr.f32.gmra.mrb[70].mxu1 %v1882_v41 }
 0x17d   : > { %v1883_v6 = vmax.f32 %v1819_v0, 0.0  ;;  %v1664_v7 = vadd.f32 %v1663_v4, %v4570_v47 }
 0x17e   : > { %v1822_v44 = vadd.f32 %v4599_v60, %v1669_v3 }
 0x17f   : > { %v1821_v8 = vadd.f32 %v4599_v60, %v1664_v7  ;;  %v3926_v10 = vpop.f32.mrb[44].mxu0  ;;  %4046 = vmatprep.mubr.f32.mxu1 %v1883_v6 }
 0x180   : > { %v1886_v45 = vmax.f32 %v1822_v44, 0.0  ;;  %v1679_v11 = vadd.f32 %v3926_v10, %v4572_v48  ;;  %v1673_v12 = vpop.f32.mrb[45].mxu0  ;;  %4047 = vmatmul.mubr.f32.gmra.mrb[72].mxu1 %v1884_v43 }
 0x181   : > { %v1885_v14 = vmax.f32 %v1821_v8, 0.0  ;;  %v1674_v15 = vadd.f32 %v1673_v12, %v4574_v49 }
 0x182   : > { %v1824_v46 = vadd.f32 %v4599_v60, %v1679_v11 }
 0x183   : > { %v1823_v16 = vadd.f32 %v4599_v60, %v1674_v15  ;;  %v3929_v18 = vpop.f32.mrb[46].mxu0  ;;  %4049 = vmatprep.mubr.f32.mxu1 %v1885_v14 }
 0x184   : > { %v1888_v47 = vmax.f32 %v1824_v46, 0.0  ;;  %v1689_v36 = vadd.f32 %v3929_v18, %v4576_v50  ;;  %v1683_v19 = vpop.f32.mrb[47].mxu0  ;;  %4050 = vmatmul.mubr.f32.gmra.mrb[74].mxu1 %v1886_v45 }
 0x185   : > { %v1887_v37 = vmax.f32 %v1823_v16, 0.0  ;;  %v1684_v20 = vadd.f32 %v1683_v19, %v4578_v51 }
 0x186   : > { %v1826_v48 = vadd.f32 %v4599_v60, %v1689_v36 }
 0x187   : > { %v1825_v22 = vadd.f32 %v4599_v60, %v1684_v20  ;;  %v3932_v23 = vpop.f32.mrb[48].mxu0  ;;  %4052 = vmatprep.mubr.f32.mxu1 %v1887_v37 }
 0x188   : > { %v1890_v49 = vmax.f32 %v1826_v48, 0.0  ;;  %v1699_v24 = vadd.f32 %v3932_v23, %v4580_v52  ;;  %v1693_v38 = vpop.f32.mrb[49].mxu0  ;;  %4053 = vmatmul.mubr.f32.gmra.mrb[76].mxu1 %v1888_v47 }
 0x189   : > { %v1889_v26 = vmax.f32 %v1825_v22, 0.0  ;;  %v1694_v27 = vadd.f32 %v1693_v38, %v4582_v53 }
 0x18a   : > { %v1828_v50 = vadd.f32 %v4599_v60, %v1699_v24 }
 0x18b   : > { %v1827_v39 = vadd.f32 %v4599_v60, %v1694_v27  ;;  %v3935_v28 = vpop.f32.mrb[50].mxu0  ;;  %4055 = vmatprep.mubr.f32.mxu1 %v1889_v26 }
 0x18c   : > { %v1892_v51 = vmax.f32 %v1828_v50, 0.0  ;;  %v1709_v29 = vadd.f32 %v3935_v28, %v4584_v54  ;;  %v1703_v30 = vpop.f32.mrb[51].mxu0  ;;  %4056 = vmatmul.mubr.f32.gmra.mrb[78].mxu1 %v1890_v49 }
 0x18d   : > { %v1891_v31 = vmax.f32 %v1827_v39, 0.0  ;;  %v1704_v40 = vadd.f32 %v1703_v30, %v4586_v55 }
 0x18e   : > { %v1830_v52 = vadd.f32 %v4599_v60, %v1709_v29 }
 0x18f   : > { %v1829_v32 = vadd.f32 %v4599_v60, %v1704_v40  ;;  %v3938_v33 = vpop.f32.mrb[52].mxu0  ;;  %4058 = vmatprep.mubr.f32.mxu1 %v1891_v31 }
 0x190   : > { %v1894_v53 = vmax.f32 %v1830_v52, 0.0  ;;  %v1719_v41 = vadd.f32 %v3938_v33, %v4588_v56  ;;  %v1713_v34 = vpop.f32.mrb[53].mxu0  ;;  %4059 = vmatmul.mubr.f32.gmra.mrb[80].mxu1 %v1892_v51  ;;  %v3499_v51 = vld [vmem:[%s4717_s30 + $0x8] sm:$0xff]  }
 0x191   : > { %v1893_v35 = vmax.f32 %v1829_v32, 0.0  ;;  %v1714_v61 = vadd.f32 %v1713_v34, %v4590_v57 }
 0x192   : > { %v1832_v54 = vadd.f32 %v4599_v60, %v1719_v41 }
 0x193   : > { %v1831_v63 = vadd.f32 %v4599_v60, %v1714_v61  ;;  %v3941_v42 = vpop.f32.mrb[54].mxu0  ;;  %4061 = vmatprep.mubr.f32.mxu1 %v1893_v35 }
 0x194   : > { %v1896_v55 = vmax.f32 %v1832_v54, 0.0  ;;  %v1729_v0 = vadd.f32 %v3941_v42, %v4592_v58  ;;  %v1723_v2 = vpop.f32.mrb[55].mxu0  ;;  %4062 = vmatmul.mubr.f32.gmra.mrb[82].mxu1 %v1894_v53  ;;  %v3316_v53 = vunpack.c.h.bf16 %v3499_v51  ;;  %v3315_v54 = vunpack.c.l.bf16 %v3499_v51 }
 0x195   : > { %v1895_v43 = vmax.f32 %v1831_v63, 0.0  ;;  %v1724_v3 = vadd.f32 %v1723_v2, %v4594_v59  ;;  %v3500_v63 = vld [vmem:[%s4717_s30 + $0x10] sm:$0xff]  }
 0x196   : > { %v1834_v56 = vadd.f32 %v4599_v60, %v1729_v0 }
 0x197   : > { %v1833_v4 = vadd.f32 %v4599_v60, %v1724_v3  ;;  %v3944_v6 = vpop.f32.mrb[56].mxu0  ;;  %4064 = vmatprep.mubr.f32.mxu1 %v1895_v43 }
 0x198   : > { %v1898_v57 = vmax.f32 %v1834_v56, 0.0  ;;  %v1739_v7 = vadd.f32 %v3944_v6, %v4601_v62  ;;  %v1733_v44 = vpop.f32.mrb[57].mxu0  ;;  %4065 = vmatmul.mubr.f32.gmra.mrb[84].mxu1 %v1896_v55  ;;  %v3319_v56 = vunpack.c.l.bf16 %v3500_v63 }
 0x199   : > { %v1897_v8 = vmax.f32 %v1833_v4, 0.0  ;;  %v1734_v10 = vadd.f32 %v1733_v44, %v4604_v1  ;;  %v3320_v4 = vunpack.c.h.bf16 %v3500_v63 }
 0x19a   : > { %v1836_v58 = vadd.f32 %v4599_v60, %v1739_v7 }
 0x19b   : > { %v1835_v45 = vadd.f32 %v4599_v60, %v1734_v10  ;;  %v3947_v11 = vpop.f32.mrb[58].mxu0  ;;  %4067 = vmatprep.mubr.f32.mxu1 %v1897_v8  ;;  %v3501_v8 = vld [vmem:[%s4717_s30 + $0x18] sm:$0xff]  }
 0x19c   : > { %v1900_v59 = vmax.f32 %v1836_v58, 0.0  ;;  %v1749_v12 = vadd.f32 %v3947_v11, %v4607_v5  ;;  %v1743_v14 = vpop.f32.mrb[59].mxu0  ;;  %4068 = vmatmul.mubr.f32.gmra.mrb[86].mxu1 %v1898_v57 }
 0x19d   : > { %v1899_v15 = vmax.f32 %v1835_v45, 0.0  ;;  %v1744_v46 = vadd.f32 %v1743_v14, %v4610_v9  ;;  %v3323_v14 = vunpack.c.l.bf16 %v3501_v8 }
 0x19e   : > { %v1838_v62 = vadd.f32 %v4599_v60, %v1749_v12 }
 0x19f   : > { %v1837_v16 = vadd.f32 %v4599_v60, %v1744_v46  ;;  %v3950_v18 = vpop.f32.mrb[60].mxu0  ;;  %4070 = vmatprep.mubr.f32.mxu1 %v1899_v15 }
 0x1a0   : > { %v1902_v1 = vmax.f32 %v1838_v62, 0.0  ;;  %v1759_v47 = vadd.f32 %v3950_v18, %v4613_v13  ;;  %v1753_v36 = vpop.f32.mrb[61].mxu0  ;;  %4071 = vmatmul.mubr.f32.gmra.mrb[88].mxu1 %v1900_v59  ;;  %v3502_v18 = vld [vmem:[%s4717_s30 + $0x20] sm:$0xff]  }
 0x1a1   : > { %v1901_v19 = vmax.f32 %v1837_v16, 0.0  ;;  %v1754_v37 = vadd.f32 %v1753_v36, %v4616_v17  ;;  %v3324_v16 = vunpack.c.h.bf16 %v3501_v8 }
 0x1a2   : > { %v1840_v5 = vadd.f32 %v4599_v60, %v1759_v47 }
 0x1a3   : > { %v1839_v20 = vadd.f32 %v4599_v60, %v1754_v37  ;;  %v3953_v48 = vpop.f32.mrb[62].mxu0  ;;  %4073 = vmatprep.mubr.f32.mxu1 %v1901_v19 }
 0x1a4   : > { %v1904_v9 = vmax.f32 %v1840_v5, 0.0  ;;  %v1769_v22 = vadd.f32 %v3953_v48, %v4619_v21  ;;  %v1763_v23 = vpop.f32.mrb[63].mxu0  ;;  %4074 = vmatmul.mubr.f32.gmra.mrb[90].mxu1 %v1902_v1  ;;  %v4722_v21 = vld [vmem:[%s5028_s7] ss:$0 sm:$0xff]  ;;  %v3327_v48 = vunpack.c.l.bf16 %v3502_v18 }
 0x1a5   : > { %v1903_v49 = vmax.f32 %v1839_v20, 0.0  ;;  %v1764_v13 = vadd.f32 %v1763_v23, %v4622_v25  ;;  %v3310_v25 = vld [vmem:[%s4717_s30] sm:$0xff]  }
 0x1a6   : > { %v1842_v24 = vadd.f32 %v4599_v60, %v1769_v22  ;;  %v3312_v39 = vunpack.c.h.bf16 %v3310_v25  ;;  %v3311_v30 = vunpack.c.l.bf16 %v3310_v25 }
 0x1a7   : > { %v1841_v38 = vadd.f32 %v4599_v60, %v1764_v13  ;;  %4076 = vmatprep.mubr.f32.mxu1 %v1903_v49  ;;  %v3328_v49 = vunpack.c.h.bf16 %v3502_v18  ;;  %v3503_v13 = vld [vmem:[%s4717_s30 + $0x28] sm:$0xff]  }
 0x1a8   : > { %v1906_v17 = vmax.f32 %v1842_v24, 0.0  ;;  %4077 = vmatmul.mubr.f32.gmra.mrb[92].mxu1 %v1904_v9 }
 0x1a9   : > { %v1905_v26 = vmax.f32 %v1841_v38, 0.0 }
 0x1ab   : > { %4079 = vmatprep.mubr.f32.mxu1 %v1905_v26 }
 0x1ac   : > { %4080 = vmatmul.mubr.f32.gmra.mrb[94].mxu1 %v1906_v17 }
 0x201   : > { %v3988_v60 = vpop.f32.mrb[32].mxu1 }
 0x202   : > { %v2002_v27 = vadd.f32 %v3988_v60, %v4722_v21  ;;  %v1996_v50 = vpop.f32.mrb[33].mxu1 }
 0x203   : > { %v1997_v28 = vadd.f32 %v4722_v21, %v1996_v50  ;;  %v3331_v50 = vunpack.c.l.bf16 %v3503_v13 }
 0x204   : > { %v2316_v29 = vmax.f32 %v2002_v27, 0.0 }
 0x205   : > { %v2315_v31 = vmax.f32 %v1997_v28, 0.0  ;;  %v3991_v40 = vpop.f32.mrb[34].mxu1 }
 0x206   : > { %v2012_v52 = vadd.f32 %v3991_v40, %v4722_v21  ;;  %v2006_v32 = vpop.f32.mrb[35].mxu1  ;;  %v2508_v33 = vmul.f32 %v3312_v39, %v2316_v29  ;;  %v3332_v29 = vunpack.c.h.bf16 %v3503_v13 }
 0x207   : > { %v2007_v41 = vadd.f32 %v4722_v21, %v2006_v32  ;;  %v2507_v61 = vmul.f32 %v3311_v30, %v2315_v31  ;;  %v3504_v30 = vld [vmem:[%s4717_s30 + $0x30] sm:$0xff]  }
 0x208   : > { %v2318_v34 = vmax.f32 %v2012_v52, 0.0  ;;  %v2574_v35 = vsel %vm617_vm0, %v2508_v33, 0.0  ;;  %v3336_v63 = vunpack.c.h.bf16 %v3504_v30 }
 0x209   : > { %v2317_v42 = vmax.f32 %v2007_v41, 0.0  ;;  %2575 = vadd.xlane.f32.xlu0 %v2574_v35  ;;  %v3994_v55 = vpop.f32.mrb[36].mxu1  ;;  %v2571_v57 = vsel %vm617_vm0, %v2507_v61, 0.0 }
 0x20a   : > { %v2022_v0 = vadd.f32 %v3994_v55, %v4722_v21  ;;  %v2016_v2 = vpop.f32.mrb[37].mxu1  ;;  %v2510_v43 = vmul.f32 %v3316_v53, %v2318_v34  ;;  %v3335_v34 = vunpack.c.l.bf16 %v3504_v30 }
 0x20b   : > { %v2017_v3 = vadd.f32 %v4722_v21, %v2016_v2  ;;  %v2509_v44 = vmul.f32 %v3315_v54, %v2317_v42  ;;  %v3505_v42 = vld [vmem:[%s4717_s30 + $0x38] sm:$0xff]  }
 0x20c   : > { %v2320_v6 = vmax.f32 %v2022_v0, 0.0  ;;  %v2580_v7 = vsel %vm617_vm0, %v2510_v43, 0.0  ;;  %v3340_v8 = vunpack.c.h.bf16 %v3505_v42 }
 0x20d   : > { %v2319_v10 = vmax.f32 %v2017_v3, 0.0  ;;  %2572 = vadd.xlane.f32.xlu0 %v2571_v57  ;;  %2581 = vadd.xlane.f32.xlu1 %v2580_v7  ;;  %v3997_v58 = vpop.f32.mrb[38].mxu1  ;;  %v2577_v46 = vsel %vm617_vm0, %v2509_v44, 0.0 }
 0x20e   : > { %v2032_v45 = vadd.f32 %v3997_v58, %v4722_v21  ;;  %v2026_v11 = vpop.f32.mrb[39].mxu1  ;;  %v2512_v62 = vmul.f32 %v3320_v4, %v2320_v6  ;;  %v3339_v6 = vunpack.c.l.bf16 %v3505_v42 }
 0x20f   : > { %v2027_v59 = vadd.f32 %v4722_v21, %v2026_v11  ;;  %v2511_v12 = vmul.f32 %v3319_v56, %v2319_v10  ;;  %v3506_v10 = vld [vmem:[%s4717_s30 + $0x40] sm:$0xff]  }
 0x210   : > { %v2322_v15 = vmax.f32 %v2032_v45, 0.0  ;;  %v2586_v22 = vsel %vm617_vm0, %v2512_v62, 0.0 }
 0x211   : > { %v2321_v1 = vmax.f32 %v2027_v59, 0.0  ;;  %2578 = vadd.xlane.f32.xlu1 %v2577_v46  ;;  %v4000_v47 = vpop.f32.mrb[40].mxu1  ;;  %v2583_v36 = vsel %vm617_vm0, %v2511_v12, 0.0  ;;  %v3343_v46 = vunpack.c.l.bf16 %v3506_v10 }
 0x212   : > { %v2042_v19 = vadd.f32 %v4000_v47, %v4722_v21  ;;  %2584 = vadd.xlane.f32.xlu0 %v2583_v36  ;;  %v2036_v37 = vpop.f32.mrb[41].mxu1  ;;  %v2514_v23 = vmul.f32 %v3324_v16, %v2322_v15  ;;  %v3507_v47 = vld [vmem:[%s4717_s30 + $0x48] sm:$0xff]  }
 0x213   : > { %v2037_v5 = vadd.f32 %v4722_v21, %v2036_v37  ;;  %v2513_v20 = vmul.f32 %v3323_v14, %v2321_v1  ;;  %v3344_v1 = vunpack.c.h.bf16 %v3506_v10 }
 0x214   : > { %v2324_v9 = vmax.f32 %v2042_v19, 0.0  ;;  %v2592_v28 = vsel %vm617_vm0, %v2514_v23, 0.0 }
 0x215   : > { %v2323_v24 = vmax.f32 %v2037_v5, 0.0  ;;  %2587 = vadd.xlane.f32.xlu1 %v2586_v22  ;;  %v4003_v38 = vpop.f32.mrb[42].mxu1  ;;  %v2589_v17 = vsel %vm617_vm0, %v2513_v20, 0.0  ;;  %v3347_v22 = vunpack.c.l.bf16 %v3507_v47 }
 0x216   : > { %v2052_v26 = vadd.f32 %v4003_v38, %v4722_v21  ;;  %2590 = vadd.xlane.f32.xlu0 %v2589_v17  ;;  %v2046_v25 = vpop.f32.mrb[43].mxu1  ;;  %v2516_v51 = vmul.f32 %v3328_v49, %v2324_v9  ;;  %v3508_v38 = vld [vmem:[%s4717_s30 + $0x50] sm:$0xff]  }
 0x217   : > { %v2047_v60 = vadd.f32 %v4722_v21, %v2046_v25  ;;  %v2515_v27 = vmul.f32 %v3327_v48, %v2323_v24  ;;  %v3348_v24 = vunpack.c.h.bf16 %v3507_v47 }
 0x218   : > { %v2326_v39 = vmax.f32 %v2052_v26, 0.0  ;;  %v2598_v61 = vsel %vm617_vm0, %v2516_v51, 0.0 }
 0x219   : > { %v2325_v31 = vmax.f32 %v2047_v60, 0.0  ;;  %2593 = vadd.xlane.f32.xlu1 %v2592_v28  ;;  %v4006_v40 = vpop.f32.mrb[44].mxu1  ;;  %v2595_v52 = vsel %vm617_vm0, %v2515_v27, 0.0  ;;  %v3351_v28 = vunpack.c.l.bf16 %v3508_v38 }
 0x21a   : > { %v2062_v32 = vadd.f32 %v4006_v40, %v4722_v21  ;;  %2596 = vadd.xlane.f32.xlu0 %v2595_v52  ;;  %v2056_v33 = vpop.f32.mrb[45].mxu1  ;;  %v2518_v54 = vmul.f32 %v3332_v29, %v2326_v39  ;;  %v3509_v40 = vld [vmem:[%s4717_s30 + $0x58] sm:$0xff]  }
 0x21b   : > { %v2057_v53 = vadd.f32 %v4722_v21, %v2056_v33  ;;  %v2517_v41 = vmul.f32 %v3331_v50, %v2325_v31  ;;  %v3352_v31 = vunpack.c.h.bf16 %v3508_v38 }
 0x21c   : > { %v2328_v35 = vmax.f32 %v2062_v32, 0.0  ;;  %v2604_v7 = vsel %vm617_vm0, %v2518_v54, 0.0 }
 0x21d   : > { %v2327_v55 = vmax.f32 %v2057_v53, 0.0  ;;  %2599 = vadd.xlane.f32.xlu1 %v2598_v61  ;;  %v4009_v0 = vpop.f32.mrb[46].mxu1  ;;  %v2601_v2 = vsel %vm617_vm0, %v2517_v41, 0.0  ;;  %v3355_v61 = vunpack.c.l.bf16 %v3509_v40 }
 0x21e   : > { %v2072_v43 = vadd.f32 %v4009_v0, %v4722_v21  ;;  %2602 = vadd.xlane.f32.xlu0 %v2601_v2  ;;  %v2066_v3 = vpop.f32.mrb[47].mxu1  ;;  %v2520_v44 = vmul.f32 %v3336_v63, %v2328_v35  ;;  %v3510_v0 = vld [vmem:[%s4717_s30 + $0x60] sm:$0xff]  }
 0x21f   : > { %v2067_v56 = vadd.f32 %v4722_v21, %v2066_v3  ;;  %v2519_v4 = vmul.f32 %v3335_v34, %v2327_v55  ;;  %v3356_v55 = vunpack.c.h.bf16 %v3509_v40 }
 0x220   : > { %v2330_v57 = vmax.f32 %v2072_v43, 0.0  ;;  %v2610_v16 = vsel %vm617_vm0, %v2520_v44, 0.0 }
 0x221   : > { %v2329_v58 = vmax.f32 %v2067_v56, 0.0  ;;  %2605 = vadd.xlane.f32.xlu1 %v2604_v7  ;;  %v4012_v45 = vpop.f32.mrb[48].mxu1  ;;  %v2607_v11 = vsel %vm617_vm0, %v2519_v4, 0.0  ;;  %v3359_v7 = vunpack.c.l.bf16 %v3510_v0 }
 0x222   : > { %v2082_v59 = vadd.f32 %v4012_v45, %v4722_v21  ;;  %2608 = vadd.xlane.f32.xlu0 %v2607_v11  ;;  %v2076_v12 = vpop.f32.mrb[49].mxu1  ;;  %v2522_v18 = vmul.f32 %v3340_v8, %v2330_v57  ;;  %v3511_v45 = vld [vmem:[%s4717_s30 + $0x68] sm:$0xff]  }
 0x223   : > { %v2077_v14 = vadd.f32 %v4722_v21, %v2076_v12  ;;  %v2521_v15 = vmul.f32 %v3339_v6, %v2329_v58  ;;  %v3360_v58 = vunpack.c.h.bf16 %v3510_v0 }
 0x224   : > { %v2332_v62 = vmax.f32 %v2082_v59, 0.0  ;;  %v2616_v49 = vsel %vm617_vm0, %v2522_v18, 0.0 }
 0x225   : > { %v2331_v36 = vmax.f32 %v2077_v14, 0.0  ;;  %2611 = vadd.xlane.f32.xlu1 %v2610_v16  ;;  %v4015_v19 = vpop.f32.mrb[50].mxu1  ;;  %v2613_v37 = vsel %vm617_vm0, %v2521_v15, 0.0  ;;  %v3363_v16 = vunpack.c.l.bf16 %v3511_v45 }
 0x226   : > { %v2092_v5 = vadd.f32 %v4015_v19, %v4722_v21  ;;  %2614 = vadd.xlane.f32.xlu0 %v2613_v37  ;;  %v2086_v20 = vpop.f32.mrb[51].mxu1  ;;  %v2524_v13 = vmul.f32 %v3344_v1, %v2332_v62  ;;  %v3512_v19 = vld [vmem:[%s4717_s30 + $0x70] sm:$0xff]  }
 0x227   : > { %v2087_v48 = vadd.f32 %v4722_v21, %v2086_v20  ;;  %v2523_v9 = vmul.f32 %v3343_v46, %v2331_v36  ;;  %v3364_v36 = vunpack.c.h.bf16 %v3511_v45 }
 0x228   : > { %v2334_v23 = vmax.f32 %v2092_v5, 0.0  ;;  %v2622_v29 = vsel %vm617_vm0, %v2524_v13, 0.0 }
 0x229   : > { %v2333_v17 = vmax.f32 %v2087_v48, 0.0  ;;  %2617 = vadd.xlane.f32.xlu1 %v2616_v49  ;;  %v4018_v26 = vpop.f32.mrb[52].mxu1  ;;  %v2619_v25 = vsel %vm617_vm0, %v2523_v9, 0.0  ;;  %v3367_v49 = vunpack.c.l.bf16 %v3512_v19 }
 0x22a   : > { %v2102_v60 = vadd.f32 %v4018_v26, %v4722_v21  ;;  %2620 = vadd.xlane.f32.xlu0 %v2619_v25  ;;  %v2096_v27 = vpop.f32.mrb[53].mxu1  ;;  %v2526_v30 = vmul.f32 %v3348_v24, %v2334_v23  ;;  %v3513_v26 = vld [vmem:[%s4717_s30 + $0x78] sm:$0xff]  }
 0x22b   : > { %v2097_v50 = vadd.f32 %v4722_v21, %v2096_v27  ;;  %v2525_v39 = vmul.f32 %v3347_v22, %v2333_v17  ;;  %v3368_v17 = vunpack.c.h.bf16 %v3512_v19 }
 0x22c   : > { %v2336_v51 = vmax.f32 %v2102_v60, 0.0  ;;  %v2628_v63 = vsel %vm617_vm0, %v2526_v30, 0.0 }
 0x22d   : > { %v2335_v52 = vmax.f32 %v2097_v50, 0.0  ;;  %2623 = vadd.xlane.f32.xlu1 %v2622_v29  ;;  %v4021_v32 = vpop.f32.mrb[54].mxu1  ;;  %v2625_v33 = vsel %vm617_vm0, %v2525_v39, 0.0  ;;  %v3371_v29 = vunpack.c.l.bf16 %v3513_v26 }
 0x22e   : > { %v2112_v53 = vadd.f32 %v4021_v32, %v4722_v21  ;;  %2626 = vadd.xlane.f32.xlu0 %v2625_v33  ;;  %v2106_v41 = vpop.f32.mrb[55].mxu1  ;;  %v2528_v42 = vmul.f32 %v3352_v31, %v2336_v51 }
 0x22f   : > { %v2107_v34 = vadd.f32 %v4722_v21, %v2106_v41  ;;  %v2527_v35 = vmul.f32 %v3351_v28, %v2335_v52  ;;  %v3372_v52 = vunpack.c.h.bf16 %v3513_v26 }
 0x230   : > { %v2338_v54 = vmax.f32 %v2112_v53, 0.0  ;;  %v2634_v8 = vsel %vm617_vm0, %v2528_v42, 0.0  ;;  %v3514_v53 = vld [vmem:[%s4717_s30 + $0x80] sm:$0xff]  }
 0x231   : > { %v2337_v2 = vmax.f32 %v2107_v34, 0.0  ;;  %2629 = vadd.xlane.f32.xlu1 %v2628_v63  ;;  %v4024_v43 = vpop.f32.mrb[56].mxu1  ;;  %v2631_v3 = vsel %vm617_vm0, %v2527_v35, 0.0  ;;  %v3376_v42 = vunpack.c.h.bf16 %v3514_v53 }
 0x232   : > { %v2122_v56 = vadd.f32 %v4024_v43, %v4722_v21  ;;  %2632 = vadd.xlane.f32.xlu0 %v2631_v3  ;;  %v2116_v4 = vpop.f32.mrb[57].mxu1  ;;  %v2530_v10 = vmul.f32 %v3356_v55, %v2338_v54  ;;  %v3515_v43 = vld [vmem:[%s4717_s30 + $0x88] sm:$0xff]  }
 0x233   : > { %v2117_v6 = vadd.f32 %v4722_v21, %v2116_v4  ;;  %v2529_v57 = vmul.f32 %v3355_v61, %v2337_v2  ;;  %v3375_v2 = vunpack.c.l.bf16 %v3514_v53  ;;  %v3379_v45 = vunpack.c.l.bf16 %v3515_v43 }
 0x234   : > { %v2340_v44 = vmax.f32 %v2122_v56, 0.0  ;;  %v2640_v1 = vsel %vm617_vm0, %v2530_v10, 0.0 }
 0x235   : > { %v2339_v11 = vmax.f32 %v2117_v6, 0.0  ;;  %2635 = vadd.xlane.f32.xlu1 %v2634_v8  ;;  %v4027_v59 = vpop.f32.mrb[58].mxu1  ;;  %v2637_v12 = vsel %vm617_vm0, %v2529_v57, 0.0  ;;  %v3380_v8 = vunpack.c.h.bf16 %v3515_v43 }
 0x236   : > { %v2132_v14 = vadd.f32 %v4027_v59, %v4722_v21  ;;  %2638 = vadd.xlane.f32.xlu0 %v2637_v12  ;;  %v2126_v15 = vpop.f32.mrb[59].mxu1  ;;  %v2532_v47 = vmul.f32 %v3360_v58, %v2340_v44 }
 0x237   : > { %v2127_v46 = vadd.f32 %v4722_v21, %v2126_v15  ;;  %v2531_v62 = vmul.f32 %v3359_v7, %v2339_v11  ;;  %v3516_v11 = vld [vmem:[%s4717_s30 + $0x90] sm:$0xff]  }
 0x238   : > { %v2342_v18 = vmax.f32 %v2132_v14, 0.0  ;;  %v2646_v24 = vsel %vm617_vm0, %v2532_v47, 0.0  ;;  %v3383_v19 = vunpack.c.l.bf16 %v3516_v11 }
 0x239   : > { %v2341_v37 = vmax.f32 %v2127_v46, 0.0  ;;  %2641 = vadd.xlane.f32.xlu1 %v2640_v1  ;;  %v4030_v5 = vpop.f32.mrb[60].mxu1  ;;  %v2643_v20 = vsel %vm617_vm0, %v2531_v62, 0.0  ;;  %v3384_v1 = vunpack.c.h.bf16 %v3516_v11 }
 0x23a   : > { %v2142_v48 = vadd.f32 %v4030_v5, %v4722_v21  ;;  %2644 = vadd.xlane.f32.xlu0 %v2643_v20  ;;  %v2136_v9 = vpop.f32.mrb[61].mxu1  ;;  %v2534_v38 = vmul.f32 %v3364_v36, %v2342_v18 }
 0x23b   : > { %v2137_v22 = vadd.f32 %v4722_v21, %v2136_v9  ;;  %v2533_v23 = vmul.f32 %v3363_v16, %v2341_v37  ;;  %v3517_v37 = vld [vmem:[%s4717_s30 + $0x98] sm:$0xff]  }
 0x23c   : > { %v2344_v13 = vmax.f32 %v2142_v48, 0.0  ;;  %v2652_v31 = vsel %vm617_vm0, %v2534_v38, 0.0  ;;  %v3387_v26 = vunpack.c.l.bf16 %v3517_v37 }
 0x23d   : > { %v2343_v25 = vmax.f32 %v2137_v22, 0.0  ;;  %2647 = vadd.xlane.f32.xlu1 %v2646_v24  ;;  %v4033_v60 = vpop.f32.mrb[62].mxu1  ;;  %v2649_v27 = vsel %vm617_vm0, %v2533_v23, 0.0  ;;  %v3388_v24 = vunpack.c.h.bf16 %v3517_v37 }
 0x23e   : > { %v2152_v50 = vadd.f32 %v4033_v60, %v4722_v21  ;;  %2650 = vadd.xlane.f32.xlu0 %v2649_v27  ;;  %v2146_v39 = vpop.f32.mrb[63].mxu1  ;;  %v2536_v40 = vmul.f32 %v3368_v17, %v2344_v13 }
 0x23f   : > { %v2147_v28 = vadd.f32 %v4722_v21, %v2146_v39  ;;  %v2535_v51 = vmul.f32 %v3367_v49, %v2343_v25  ;;  %v3518_v25 = vld [vmem:[%s4717_s30 + $0xa0] sm:$0xff]  }
 0x240   : > { %v2346_v30 = vmax.f32 %v2152_v50, 0.0  ;;  %v2658_v54 = vsel %vm617_vm0, %v2536_v40, 0.0 }
 0x241   : > { %v2345_v32 = vmax.f32 %v2147_v28, 0.0  ;;  %2653 = vadd.xlane.f32.xlu1 %v2652_v31  ;;  %v2655_v33 = vsel %vm617_vm0, %v2535_v51, 0.0  ;;  %v3392_v31 = vunpack.c.h.bf16 %v3518_v25 }
 0x242   : > { %2656 = vadd.xlane.f32.xlu0 %v2655_v33  ;;  %v2538_v63 = vmul.f32 %v3372_v52, %v2346_v30  ;;  %v3519_v33 = vld [vmem:[%s4717_s30 + $0xa8] sm:$0xff]  }
 0x243   : > { %v4036_v41 = vpop.f32.mrb[64].mxu1  ;;  %v2537_v34 = vmul.f32 %v3371_v29, %v2345_v32  ;;  %v3391_v32 = vunpack.c.l.bf16 %v3518_v25  ;;  %v3395_v43 = vunpack.c.l.bf16 %v3519_v33 }
 0x244   : > { %v2162_v35 = vadd.f32 %v4036_v41, %v4722_v21  ;;  %v2156_v61 = vpop.f32.mrb[65].mxu1  ;;  %v2664_v7 = vsel %vm617_vm0, %v2538_v63, 0.0 }
 0x245   : > { %v2157_v55 = vadd.f32 %v4722_v21, %v2156_v61  ;;  %2659 = vadd.xlane.f32.xlu1 %v2658_v54  ;;  %v2661_v0 = vsel %vm617_vm0, %v2537_v34, 0.0 }
 0x246   : > { %v2348_v3 = vmax.f32 %v2162_v35, 0.0  ;;  %2662 = vadd.xlane.f32.xlu0 %v2661_v0 }
 0x247   : > { %v2347_v56 = vmax.f32 %v2157_v55, 0.0  ;;  %v4039_v4 = vpop.f32.mrb[66].mxu1  ;;  %v3396_v55 = vunpack.c.h.bf16 %v3519_v33 }
 0x248   : > { %v2172_v6 = vadd.f32 %v4039_v4, %v4722_v21  ;;  %v2166_v57 = vpop.f32.mrb[67].mxu1  ;;  %v2540_v44 = vmul.f32 %v3376_v42, %v2348_v3  ;;  %v3520_v3 = vld [vmem:[%s4717_s30 + $0xb0] sm:$0xff]  }
 0x249   : > { %v2167_v10 = vadd.f32 %v4722_v21, %v2166_v57  ;;  %2665 = vadd.xlane.f32.xlu1 %v2664_v7  ;;  %v2539_v58 = vmul.f32 %v3375_v2, %v2347_v56 }
 0x24a   : > { %v2350_v59 = vmax.f32 %v2172_v6, 0.0  ;;  %v2670_v16 = vsel %vm617_vm0, %v2540_v44, 0.0 }
 0x24b   : > { %v2349_v12 = vmax.f32 %v2167_v10, 0.0  ;;  %v4042_v14 = vpop.f32.mrb[68].mxu1  ;;  %v2667_v15 = vsel %vm617_vm0, %v2539_v58, 0.0  ;;  %v3400_v58 = vunpack.c.h.bf16 %v3520_v3 }
 0x24c   : > { %v2182_v46 = vadd.f32 %v4042_v14, %v4722_v21  ;;  %v2176_v62 = vpop.f32.mrb[69].mxu1  ;;  %2668 = vadd.xlane.f32.xlu0 %v2667_v15  ;;  %v2542_v18 = vmul.f32 %v3380_v8, %v2350_v59  ;;  %v3399_v59 = vunpack.c.l.bf16 %v3520_v3 }
 0x24d   : > { %v2177_v47 = vadd.f32 %v4722_v21, %v2176_v62  ;;  %2671 = vadd.xlane.f32.xlu1 %v2670_v16  ;;  %v2541_v36 = vmul.f32 %v3379_v45, %v2349_v12  ;;  %v3521_v12 = vld [vmem:[%s4717_s30 + $0xb8] sm:$0xff]  }
 0x24e   : > { %v2352_v5 = vmax.f32 %v2182_v46, 0.0  ;;  %v2676_v49 = vsel %vm617_vm0, %v2542_v18, 0.0 }
 0x24f   : > { %v2351_v20 = vmax.f32 %v2177_v47, 0.0  ;;  %v4045_v48 = vpop.f32.mrb[70].mxu1  ;;  %v2673_v9 = vsel %vm617_vm0, %v2541_v36, 0.0  ;;  %v3404_v36 = vunpack.c.h.bf16 %v3521_v12 }
 0x250   : > { %v2192_v22 = vadd.f32 %v4045_v48, %v4722_v21  ;;  %v2186_v23 = vpop.f32.mrb[71].mxu1  ;;  %2674 = vadd.xlane.f32.xlu0 %v2673_v9  ;;  %v2544_v13 = vmul.f32 %v3384_v1, %v2352_v5  ;;  %v3403_v5 = vunpack.c.l.bf16 %v3521_v12 }
 0x251   : > { %v2187_v38 = vadd.f32 %v4722_v21, %v2186_v23  ;;  %2677 = vadd.xlane.f32.xlu1 %v2676_v49  ;;  %v2543_v17 = vmul.f32 %v3383_v19, %v2351_v20  ;;  %v3522_v20 = vld [vmem:[%s4717_s30 + $0xc0] sm:$0xff]  }
 0x252   : > { %v2354_v60 = vmax.f32 %v2192_v22, 0.0  ;;  %v2682_v29 = vsel %vm617_vm0, %v2544_v13, 0.0 }
 0x253   : > { %v2353_v27 = vmax.f32 %v2187_v38, 0.0  ;;  %v4048_v50 = vpop.f32.mrb[72].mxu1  ;;  %v2679_v39 = vsel %vm617_vm0, %v2543_v17, 0.0  ;;  %v3408_v17 = vunpack.c.h.bf16 %v3522_v20 }
 0x254   : > { %v2202_v28 = vadd.f32 %v4048_v50, %v4722_v21  ;;  %v2196_v51 = vpop.f32.mrb[73].mxu1  ;;  %2680 = vadd.xlane.f32.xlu0 %v2679_v39  ;;  %v2546_v30 = vmul.f32 %v3388_v24, %v2354_v60  ;;  %v3407_v60 = vunpack.c.l.bf16 %v3522_v20 }
 0x255   : > { %v2197_v40 = vadd.f32 %v4722_v21, %v2196_v51  ;;  %2683 = vadd.xlane.f32.xlu1 %v2682_v29  ;;  %v2545_v52 = vmul.f32 %v3387_v26, %v2353_v27  ;;  %v3523_v27 = vld [vmem:[%s4717_s30 + $0xc8] sm:$0xff]  }
 0x256   : > { %v2356_v53 = vmax.f32 %v2202_v28, 0.0  ;;  %v2688_v63 = vsel %vm617_vm0, %v2546_v30, 0.0 }
 0x257   : > { %v2355_v41 = vmax.f32 %v2197_v40, 0.0  ;;  %v4051_v34 = vpop.f32.mrb[74].mxu1  ;;  %v2685_v35 = vsel %vm617_vm0, %v2545_v52, 0.0  ;;  %v3412_v52 = vunpack.c.h.bf16 %v3523_v27 }
 0x258   : > { %v2212_v61 = vadd.f32 %v4051_v34, %v4722_v21  ;;  %v2206_v54 = vpop.f32.mrb[75].mxu1  ;;  %2686 = vadd.xlane.f32.xlu0 %v2685_v35  ;;  %v2548_v42 = vmul.f32 %v3392_v31, %v2356_v53  ;;  %v3411_v53 = vunpack.c.l.bf16 %v3523_v27 }
 0x259   : > { %v2207_v0 = vadd.f32 %v4722_v21, %v2206_v54  ;;  %2689 = vadd.xlane.f32.xlu1 %v2688_v63  ;;  %v2547_v2 = vmul.f32 %v3391_v32, %v2355_v41  ;;  %v3524_v41 = vld [vmem:[%s4717_s30 + $0xd0] sm:$0xff]  }
 0x25a   : > { %v2358_v56 = vmax.f32 %v2212_v61, 0.0  ;;  %v2694_v8 = vsel %vm617_vm0, %v2548_v42, 0.0 }
 0x25b   : > { %v2357_v4 = vmax.f32 %v2207_v0, 0.0  ;;  %v4054_v6 = vpop.f32.mrb[76].mxu1  ;;  %v2691_v57 = vsel %vm617_vm0, %v2547_v2, 0.0  ;;  %v3416_v2 = vunpack.c.h.bf16 %v3524_v41 }
 0x25c   : > { %v2222_v7 = vadd.f32 %v4054_v6, %v4722_v21  ;;  %v2216_v44 = vpop.f32.mrb[77].mxu1  ;;  %2692 = vadd.xlane.f32.xlu0 %v2691_v57  ;;  %v2550_v10 = vmul.f32 %v3396_v55, %v2358_v56  ;;  %v3415_v56 = vunpack.c.l.bf16 %v3524_v41 }
 0x25d   : > { %v2217_v45 = vadd.f32 %v4722_v21, %v2216_v44  ;;  %2695 = vadd.xlane.f32.xlu1 %v2694_v8  ;;  %v2549_v11 = vmul.f32 %v3395_v43, %v2357_v4  ;;  %v3525_v4 = vld [vmem:[%s4717_s30 + $0xd8] sm:$0xff]  }
 0x25e   : > { %v2360_v14 = vmax.f32 %v2222_v7, 0.0  ;;  %v2700_v1 = vsel %vm617_vm0, %v2550_v10, 0.0 }
 0x25f   : > { %v2359_v15 = vmax.f32 %v2217_v45, 0.0  ;;  %v4057_v46 = vpop.f32.mrb[78].mxu1  ;;  %v2697_v62 = vsel %vm617_vm0, %v2549_v11, 0.0  ;;  %v3420_v11 = vunpack.c.h.bf16 %v3525_v4 }
 0x260   : > { %v2232_v16 = vadd.f32 %v4057_v46, %v4722_v21  ;;  %v2226_v18 = vpop.f32.mrb[79].mxu1  ;;  %2698 = vadd.xlane.f32.xlu0 %v2697_v62  ;;  %v2552_v47 = vmul.f32 %v3400_v58, %v2360_v14  ;;  %v3419_v14 = vunpack.c.l.bf16 %v3525_v4 }
 0x261   : > { %v2227_v19 = vadd.f32 %v4722_v21, %v2226_v18  ;;  %2701 = vadd.xlane.f32.xlu1 %v2700_v1  ;;  %v2551_v37 = vmul.f32 %v3399_v59, %v2359_v15  ;;  %v3526_v15 = vld [vmem:[%s4717_s30 + $0xe0] sm:$0xff]  }
 0x262   : > { %v2362_v48 = vmax.f32 %v2232_v16, 0.0  ;;  %v2706_v24 = vsel %vm617_vm0, %v2552_v47, 0.0 }
 0x263   : > { %v2361_v9 = vmax.f32 %v2227_v19, 0.0  ;;  %v4060_v22 = vpop.f32.mrb[80].mxu1  ;;  %v2703_v23 = vsel %vm617_vm0, %v2551_v37, 0.0  ;;  %v3424_v37 = vunpack.c.h.bf16 %v3526_v15 }
 0x264   : > { %v2242_v49 = vadd.f32 %v4060_v22, %v4722_v21  ;;  %v2236_v13 = vpop.f32.mrb[81].mxu1  ;;  %2704 = vadd.xlane.f32.xlu0 %v2703_v23  ;;  %v2554_v38 = vmul.f32 %v3404_v36, %v2362_v48  ;;  %v3423_v48 = vunpack.c.l.bf16 %v3526_v15 }
 0x265   : > { %v2237_v26 = vadd.f32 %v4722_v21, %v2236_v13  ;;  %2707 = vadd.xlane.f32.xlu1 %v2706_v24  ;;  %v2553_v25 = vmul.f32 %v3403_v5, %v2361_v9  ;;  %v3527_v9 = vld [vmem:[%s4717_s30 + $0xe8] sm:$0xff]  }
 0x266   : > { %v2364_v50 = vmax.f32 %v2242_v49, 0.0  ;;  %v2712_v31 = vsel %vm617_vm0, %v2554_v38, 0.0 }
 0x267   : > { %v2363_v39 = vmax.f32 %v2237_v26, 0.0  ;;  %v4063_v28 = vpop.f32.mrb[82].mxu1  ;;  %v2709_v51 = vsel %vm617_vm0, %v2553_v25, 0.0  ;;  %v3428_v25 = vunpack.c.h.bf16 %v3527_v9 }
 0x268   : > { %v2252_v29 = vadd.f32 %v4063_v28, %v4722_v21  ;;  %v2246_v30 = vpop.f32.mrb[83].mxu1  ;;  %2710 = vadd.xlane.f32.xlu0 %v2709_v51  ;;  %v2556_v40 = vmul.f32 %v3408_v17, %v2364_v50  ;;  %v3427_v50 = vunpack.c.l.bf16 %v3527_v9 }
 0x269   : > { %v2247_v32 = vadd.f32 %v4722_v21, %v2246_v30  ;;  %2713 = vadd.xlane.f32.xlu1 %v2712_v31  ;;  %v2555_v33 = vmul.f32 %v3407_v60, %v2363_v39  ;;  %v3528_v39 = vld [vmem:[%s4717_s30 + $0xf0] sm:$0xff]  }
 0x26a   : > { %v2366_v34 = vmax.f32 %v2252_v29, 0.0  ;;  %v2718_v55 = vsel %vm617_vm0, %v2556_v40, 0.0 }
 0x26b   : > { %v2365_v35 = vmax.f32 %v2247_v32, 0.0  ;;  %v4066_v61 = vpop.f32.mrb[84].mxu1  ;;  %v2715_v54 = vsel %vm617_vm0, %v2555_v33, 0.0  ;;  %v3432_v33 = vunpack.c.h.bf16 %v3528_v39 }
 0x26c   : > { %v2262_v63 = vadd.f32 %v4066_v61, %v4722_v21  ;;  %v2256_v42 = vpop.f32.mrb[85].mxu1  ;;  %2716 = vadd.xlane.f32.xlu0 %v2715_v54  ;;  %v2558_v0 = vmul.f32 %v3412_v52, %v2366_v34  ;;  %v3431_v34 = vunpack.c.l.bf16 %v3528_v39 }
 0x26d   : > { %v2257_v43 = vadd.f32 %v4722_v21, %v2256_v42  ;;  %2719 = vadd.xlane.f32.xlu1 %v2718_v55  ;;  %v2557_v3 = vmul.f32 %v3411_v53, %v2365_v35  ;;  %v3529_v35 = vld [vmem:[%s4717_s30 + $0xf8] sm:$0xff]  }
 0x26e   : > { %v2368_v6 = vmax.f32 %v2262_v63, 0.0  ;;  %v2724_v58 = vsel %vm617_vm0, %v2558_v0, 0.0 }
 0x26f   : > { %v2367_v57 = vmax.f32 %v2257_v43, 0.0  ;;  %v4069_v7 = vpop.f32.mrb[86].mxu1  ;;  %v2721_v44 = vsel %vm617_vm0, %v2557_v3, 0.0  ;;  %v3436_v3 = vunpack.c.h.bf16 %v3529_v35 }
 0x270   : > { %v2272_v8 = vadd.f32 %v4069_v7, %v4722_v21  ;;  %v2266_v10 = vpop.f32.mrb[87].mxu1  ;;  %2722 = vadd.xlane.f32.xlu0 %v2721_v44  ;;  %v2560_v45 = vmul.f32 %v3416_v2, %v2368_v6  ;;  %v3435_v6 = vunpack.c.l.bf16 %v3529_v35 }
 0x271   : > { %v2267_v59 = vadd.f32 %v4722_v21, %v2266_v10  ;;  %2725 = vadd.xlane.f32.xlu1 %v2724_v58  ;;  %v2559_v12 = vmul.f32 %v3415_v56, %v2367_v57 }
 0x272   : > { %v2370_v46 = vmax.f32 %v2272_v8, 0.0  ;;  %v2730_v36 = vsel %vm617_vm0, %v2560_v45, 0.0 }
 0x273   : > { %v2369_v62 = vmax.f32 %v2267_v59, 0.0  ;;  %v4072_v16 = vpop.f32.mrb[88].mxu1  ;;  %v2727_v18 = vsel %vm617_vm0, %v2559_v12, 0.0 }
 0x274   : > { %v2282_v1 = vadd.f32 %v4072_v16, %v4722_v21  ;;  %v2276_v47 = vpop.f32.mrb[89].mxu1  ;;  %2728 = vadd.xlane.f32.xlu0 %v2727_v18  ;;  %v2562_v19 = vmul.f32 %v3420_v11, %v2370_v46 }
 0x275   : > { %v2277_v5 = vadd.f32 %v4722_v21, %v2276_v47  ;;  %2731 = vadd.xlane.f32.xlu1 %v2730_v36  ;;  %v2561_v20 = vmul.f32 %v3419_v14, %v2369_v62 }
 0x276   : > { %v2372_v22 = vmax.f32 %v2282_v1, 0.0  ;;  %v2736_v17 = vsel %vm617_vm0, %v2562_v19, 0.0 }
 0x277   : > { %v2371_v23 = vmax.f32 %v2277_v5, 0.0  ;;  %v4075_v49 = vpop.f32.mrb[90].mxu1  ;;  %v2733_v13 = vsel %vm617_vm0, %v2561_v20, 0.0 }
 0x278   : > { %v2292_v24 = vadd.f32 %v4075_v49, %v4722_v21  ;;  %v2286_v38 = vpop.f32.mrb[91].mxu1  ;;  %2734 = vadd.xlane.f32.xlu0 %v2733_v13  ;;  %v2564_v26 = vmul.f32 %v3424_v37, %v2372_v22 }
 0x279   : > { %v2287_v60 = vadd.f32 %v4722_v21, %v2286_v38  ;;  %2737 = vadd.xlane.f32.xlu1 %v2736_v17  ;;  %v2563_v27 = vmul.f32 %v3423_v48, %v2371_v23 }
 0x27a   : > { %v2374_v28 = vmax.f32 %v2292_v24, 0.0  ;;  %v2742_v52 = vsel %vm617_vm0, %v2564_v26, 0.0 }
 0x27b   : > { %v2373_v51 = vmax.f32 %v2287_v60, 0.0  ;;  %v4078_v29 = vpop.f32.mrb[92].mxu1  ;;  %v2739_v30 = vsel %vm617_vm0, %v2563_v27, 0.0 }
 0x27c   : > { %v2302_v31 = vadd.f32 %v4078_v29, %v4722_v21  ;;  %v2296_v40 = vpop.f32.mrb[93].mxu1  ;;  %2740 = vadd.xlane.f32.xlu0 %v2739_v30  ;;  %v2566_v32 = vmul.f32 %v3428_v25, %v2374_v28 }
 0x27d   : > { %v2297_v53 = vadd.f32 %v4722_v21, %v2296_v40  ;;  %2743 = vadd.xlane.f32.xlu1 %v2742_v52  ;;  %v2565_v41 = vmul.f32 %v3427_v50, %v2373_v51 }
 0x27e   : > { %v2376_v61 = vmax.f32 %v2302_v31, 0.0  ;;  %v2748_v2 = vsel %vm617_vm0, %v2566_v32, 0.0 }
 0x27f   : > { %v2375_v54 = vmax.f32 %v2297_v53, 0.0  ;;  %v4081_v63 = vpop.f32.mrb[94].mxu1  ;;  %v2745_v42 = vsel %vm617_vm0, %v2565_v41, 0.0 }
 0x280   : > { %v2312_v55 = vadd.f32 %v4081_v63, %v4722_v21  ;;  %v2306_v0 = vpop.f32.mrb[95].mxu1  ;;  %2746 = vadd.xlane.f32.xlu0 %v2745_v42  ;;  %v2568_v43 = vmul.f32 %v3432_v33, %v2376_v61 }
 0x281   : > { %v2307_v56 = vadd.f32 %v4722_v21, %v2306_v0  ;;  %2749 = vadd.xlane.f32.xlu1 %v2748_v2  ;;  %v2567_v4 = vmul.f32 %v3431_v34, %v2375_v54 }
 0x282   : > { %v2378_v57 = vmax.f32 %v2312_v55, 0.0  ;;  %v2754_v8 = vsel %vm617_vm0, %v2568_v43, 0.0 }
 0x283   : > { %v2377_v7 = vmax.f32 %v2307_v56, 0.0  ;;  %v2751_v44 = vsel %vm617_vm0, %v2567_v4, 0.0 }
 0x284   : > { %2752 = vadd.xlane.f32.xlu0 %v2751_v44  ;;  %v2570_v10 = vmul.f32 %v3436_v3, %v2378_v57 }
 0x285   : > { %2755 = vadd.xlane.f32.xlu1 %v2754_v8  ;;  %v2569_v58 = vmul.f32 %v3435_v6, %v2377_v7 }
 0x286   : > { %v2760_v11 = vsel %vm617_vm0, %v2570_v10, 0.0 }
 0x287   : > { %v2757_v45 = vsel %vm617_vm0, %v2569_v58, 0.0 }
 0x288   : > { %2758 = vadd.xlane.f32.xlu0 %v2757_v45 }
 0x289   : > { %2761 = vadd.xlane.f32.xlu1 %v2760_v11 }
 0x296   : > { %v2576_v21 = vpop.xlane.xlu0 %2575 }
 0x297   : > { %2765 = vst.msk [vmem:[%s4888_s15 + $0x8] sm:$0xff] %vm2763_vm1, %v2576_v21 }
 0x29a   : > { %v2573_v59 = vpop.xlane.xlu0 %2572  ;;  %v2582_v12 = vpop.xlane.xlu1 %2581 }
 0x29b   : > { %2764 = vst.msk [vmem:[%s4888_s15] sm:$0xff] %vm2763_vm1, %v2573_v59  ;;  %2767 = vst.msk [vmem:[%s4888_s15 + $0x18] sm:$0xff] %vm2763_vm1, %v2582_v12 }
 0x29e   : > { %v2579_v14 = vpop.xlane.xlu1 %2578 }
 0x29f   : > { %2766 = vst.msk [vmem:[%s4888_s15 + $0x10] sm:$0xff] %vm2763_vm1, %v2579_v14  ;;  %v2585_v15 = vpop.xlane.xlu0 %2584 }
 0x2a0   : > { %2768 = vst.msk [vmem:[%s4888_s15 + $0x20] sm:$0xff] %vm2763_vm1, %v2585_v15 }
 0x2a2   : > { %v2588_v46 = vpop.xlane.xlu1 %2587 }
 0x2a3   : > { %2769 = vst.msk [vmem:[%s4888_s15 + $0x28] sm:$0xff] %vm2763_vm1, %v2588_v46  ;;  %v2591_v62 = vpop.xlane.xlu0 %2590 }
 0x2a4   : > { %2770 = vst.msk [vmem:[%s4888_s15 + $0x30] sm:$0xff] %vm2763_vm1, %v2591_v62 }
 0x2a6   : > { %v2594_v16 = vpop.xlane.xlu1 %2593 }
 0x2a7   : > { %2771 = vst.msk [vmem:[%s4888_s15 + $0x38] sm:$0xff] %vm2763_vm1, %v2594_v16  ;;  %v2597_v18 = vpop.xlane.xlu0 %2596 }
 0x2a8   : > { %2772 = vst.msk [vmem:[%s4888_s15 + $0x40] sm:$0xff] %vm2763_vm1, %v2597_v18 }
 0x2aa   : > { %v2600_v1 = vpop.xlane.xlu1 %2599 }
 0x2ab   : > { %2773 = vst.msk [vmem:[%s4888_s15 + $0x48] sm:$0xff] %vm2763_vm1, %v2600_v1  ;;  %v2603_v47 = vpop.xlane.xlu0 %2602 }
 0x2ac   : > { %2774 = vst.msk [vmem:[%s4888_s15 + $0x50] sm:$0xff] %vm2763_vm1, %v2603_v47 }
 0x2ae   : > { %v2606_v36 = vpop.xlane.xlu1 %2605 }
 0x2af   : > { %2775 = vst.msk [vmem:[%s4888_s15 + $0x58] sm:$0xff] %vm2763_vm1, %v2606_v36  ;;  %v2609_v19 = vpop.xlane.xlu0 %2608 }
 0x2b0   : > { %2776 = vst.msk [vmem:[%s4888_s15 + $0x60] sm:$0xff] %vm2763_vm1, %v2609_v19 }
 0x2b2   : > { %v2612_v37 = vpop.xlane.xlu1 %2611 }
 0x2b3   : > { %2777 = vst.msk [vmem:[%s4888_s15 + $0x68] sm:$0xff] %vm2763_vm1, %v2612_v37  ;;  %v2615_v5 = vpop.xlane.xlu0 %2614 }
 0x2b4   : > { %2778 = vst.msk [vmem:[%s4888_s15 + $0x70] sm:$0xff] %vm2763_vm1, %v2615_v5 }
 0x2b6   : > { %v2618_v20 = vpop.xlane.xlu1 %2617 }
 0x2b7   : > { %2779 = vst.msk [vmem:[%s4888_s15 + $0x78] sm:$0xff] %vm2763_vm1, %v2618_v20  ;;  %v2621_v48 = vpop.xlane.xlu0 %2620 }
 0x2b8   : > { %2780 = vst.msk [vmem:[%s4888_s15 + $0x80] sm:$0xff] %vm2763_vm1, %v2621_v48 }
 0x2ba   : > { %v2624_v9 = vpop.xlane.xlu1 %2623 }
 0x2bb   : > { %2781 = vst.msk [vmem:[%s4888_s15 + $0x88] sm:$0xff] %vm2763_vm1, %v2624_v9  ;;  %v2627_v22 = vpop.xlane.xlu0 %2626 }
 0x2bc   : > { %2782 = vst.msk [vmem:[%s4888_s15 + $0x90] sm:$0xff] %vm2763_vm1, %v2627_v22 }
 0x2be   : > { %v2630_v23 = vpop.xlane.xlu1 %2629 }
 0x2bf   : > { %2783 = vst.msk [vmem:[%s4888_s15 + $0x98] sm:$0xff] %vm2763_vm1, %v2630_v23  ;;  %v2633_v49 = vpop.xlane.xlu0 %2632 }
 0x2c0   : > { %2784 = vst.msk [vmem:[%s4888_s15 + $0xa0] sm:$0xff] %vm2763_vm1, %v2633_v49 }
 0x2c2   : > { %v2636_v13 = vpop.xlane.xlu1 %2635 }
 0x2c3   : > { %2785 = vst.msk [vmem:[%s4888_s15 + $0xa8] sm:$0xff] %vm2763_vm1, %v2636_v13  ;;  %v2639_v24 = vpop.xlane.xlu0 %2638 }
 0x2c4   : > { %2786 = vst.msk [vmem:[%s4888_s15 + $0xb0] sm:$0xff] %vm2763_vm1, %v2639_v24 }
 0x2c6   : > { %v2642_v38 = vpop.xlane.xlu1 %2641 }
 0x2c7   : > { %2787 = vst.msk [vmem:[%s4888_s15 + $0xb8] sm:$0xff] %vm2763_vm1, %v2642_v38  ;;  %v2645_v17 = vpop.xlane.xlu0 %2644 }
 0x2c8   : > { %2788 = vst.msk [vmem:[%s4888_s15 + $0xc0] sm:$0xff] %vm2763_vm1, %v2645_v17 }
 0x2ca   : > { %v2648_v26 = vpop.xlane.xlu1 %2647 }
 0x2cb   : > { %2789 = vst.msk [vmem:[%s4888_s15 + $0xc8] sm:$0xff] %vm2763_vm1, %v2648_v26  ;;  %v2651_v25 = vpop.xlane.xlu0 %2650 }
 0x2cc   : > { %2790 = vst.msk [vmem:[%s4888_s15 + $0xd0] sm:$0xff] %vm2763_vm1, %v2651_v25 }
 0x2ce   : > { %v2654_v60 = vpop.xlane.xlu1 %2653 }
 0x2cf   : > { %2791 = vst.msk [vmem:[%s4888_s15 + $0xd8] sm:$0xff] %vm2763_vm1, %v2654_v60  ;;  %v2657_v27 = vpop.xlane.xlu0 %2656 }
 0x2d0   : > { %2792 = vst.msk [vmem:[%s4888_s15 + $0xe0] sm:$0xff] %vm2763_vm1, %v2657_v27 }
 0x2d2   : > { %v2660_v50 = vpop.xlane.xlu1 %2659 }
 0x2d3   : > { %2793 = vst.msk [vmem:[%s4888_s15 + $0xe8] sm:$0xff] %vm2763_vm1, %v2660_v50  ;;  %v2663_v39 = vpop.xlane.xlu0 %2662 }
 0x2d4   : > { %2794 = vst.msk [vmem:[%s4888_s15 + $0xf0] sm:$0xff] %vm2763_vm1, %v2663_v39 }
 0x2d6   : > { %v2666_v28 = vpop.xlane.xlu1 %2665 }
 0x2d7   : > { %2795 = vst.msk [vmem:[%s4888_s15 + $0xf8] sm:$0xff] %vm2763_vm1, %v2666_v28 }
 0x2d9   : > { %v2669_v51 = vpop.xlane.xlu0 %2668 }
 0x2da   : > { %2796 = vst.msk [vmem:[%s4888_s15 + $0x100] sm:$0xff] %vm2763_vm1, %v2669_v51  ;;  %v2672_v29 = vpop.xlane.xlu1 %2671 }
 0x2db   : > { %2797 = vst.msk [vmem:[%s4888_s15 + $0x108] sm:$0xff] %vm2763_vm1, %v2672_v29 }
 0x2dd   : > { %v2675_v30 = vpop.xlane.xlu0 %2674 }
 0x2de   : > { %2798 = vst.msk [vmem:[%s4888_s15 + $0x110] sm:$0xff] %vm2763_vm1, %v2675_v30  ;;  %v2678_v31 = vpop.xlane.xlu1 %2677 }
 0x2df   : > { %2799 = vst.msk [vmem:[%s4888_s15 + $0x118] sm:$0xff] %vm2763_vm1, %v2678_v31 }
 0x2e1   : > { %v2681_v40 = vpop.xlane.xlu0 %2680 }
 0x2e2   : > { %2800 = vst.msk [vmem:[%s4888_s15 + $0x120] sm:$0xff] %vm2763_vm1, %v2681_v40  ;;  %v2684_v52 = vpop.xlane.xlu1 %2683 }
 0x2e3   : > { %2801 = vst.msk [vmem:[%s4888_s15 + $0x128] sm:$0xff] %vm2763_vm1, %v2684_v52 }
 0x2e5   : > { %v2687_v32 = vpop.xlane.xlu0 %2686 }
 0x2e6   : > { %2802 = vst.msk [vmem:[%s4888_s15 + $0x130] sm:$0xff] %vm2763_vm1, %v2687_v32  ;;  %v2690_v33 = vpop.xlane.xlu1 %2689 }
 0x2e7   : > { %2803 = vst.msk [vmem:[%s4888_s15 + $0x138] sm:$0xff] %vm2763_vm1, %v2690_v33 }
 0x2e9   : > { %v2693_v53 = vpop.xlane.xlu0 %2692 }
 0x2ea   : > { %2804 = vst.msk [vmem:[%s4888_s15 + $0x140] sm:$0xff] %vm2763_vm1, %v2693_v53  ;;  %v2696_v41 = vpop.xlane.xlu1 %2695 }
 0x2eb   : > { %2805 = vst.msk [vmem:[%s4888_s15 + $0x148] sm:$0xff] %vm2763_vm1, %v2696_v41 }
 0x2ed   : > { %v2699_v34 = vpop.xlane.xlu0 %2698 }
 0x2ee   : > { %2806 = vst.msk [vmem:[%s4888_s15 + $0x150] sm:$0xff] %vm2763_vm1, %v2699_v34  ;;  %v2702_v35 = vpop.xlane.xlu1 %2701 }
 0x2ef   : > { %2807 = vst.msk [vmem:[%s4888_s15 + $0x158] sm:$0xff] %vm2763_vm1, %v2702_v35 }
 0x2f1   : > { %v2705_v61 = vpop.xlane.xlu0 %2704 }
 0x2f2   : > { %2808 = vst.msk [vmem:[%s4888_s15 + $0x160] sm:$0xff] %vm2763_vm1, %v2705_v61  ;;  %v2708_v54 = vpop.xlane.xlu1 %2707 }
 0x2f3   : > { %2809 = vst.msk [vmem:[%s4888_s15 + $0x168] sm:$0xff] %vm2763_vm1, %v2708_v54 }
 0x2f5   : > { %v2711_v63 = vpop.xlane.xlu0 %2710 }
 0x2f6   : > { %2810 = vst.msk [vmem:[%s4888_s15 + $0x170] sm:$0xff] %vm2763_vm1, %v2711_v63  ;;  %v2714_v42 = vpop.xlane.xlu1 %2713 }
 0x2f7   : > { %2811 = vst.msk [vmem:[%s4888_s15 + $0x178] sm:$0xff] %vm2763_vm1, %v2714_v42 }
 0x2f9   : > { %v2717_v55 = vpop.xlane.xlu0 %2716 }
 0x2fa   : > { %2812 = vst.msk [vmem:[%s4888_s15 + $0x180] sm:$0xff] %vm2763_vm1, %v2717_v55  ;;  %v2720_v0 = vpop.xlane.xlu1 %2719 }
 0x2fb   : > { %2813 = vst.msk [vmem:[%s4888_s15 + $0x188] sm:$0xff] %vm2763_vm1, %v2720_v0 }
 0x2fd   : > { %v2723_v2 = vpop.xlane.xlu0 %2722 }
 0x2fe   : > { %2814 = vst.msk [vmem:[%s4888_s15 + $0x190] sm:$0xff] %vm2763_vm1, %v2723_v2  ;;  %v2726_v43 = vpop.xlane.xlu1 %2725 }
 0x2ff   : > { %2815 = vst.msk [vmem:[%s4888_s15 + $0x198] sm:$0xff] %vm2763_vm1, %v2726_v43 }
 0x301   : > { %v2729_v3 = vpop.xlane.xlu0 %2728 }
 0x302   : > { %2816 = vst.msk [vmem:[%s4888_s15 + $0x1a0] sm:$0xff] %vm2763_vm1, %v2729_v3  ;;  %v2732_v56 = vpop.xlane.xlu1 %2731 }
 0x303   : > { %2817 = vst.msk [vmem:[%s4888_s15 + $0x1a8] sm:$0xff] %vm2763_vm1, %v2732_v56 }
 0x305   : > { %v2735_v4 = vpop.xlane.xlu0 %2734 }
 0x306   : > { %2818 = vst.msk [vmem:[%s4888_s15 + $0x1b0] sm:$0xff] %vm2763_vm1, %v2735_v4  ;;  %v2738_v6 = vpop.xlane.xlu1 %2737 }
 0x307   : > { %2819 = vst.msk [vmem:[%s4888_s15 + $0x1b8] sm:$0xff] %vm2763_vm1, %v2738_v6 }
 0x309   : > { %v2741_v57 = vpop.xlane.xlu0 %2740 }
 0x30a   : > { %2820 = vst.msk [vmem:[%s4888_s15 + $0x1c0] sm:$0xff] %vm2763_vm1, %v2741_v57  ;;  %v2744_v7 = vpop.xlane.xlu1 %2743 }
 0x30b   : > { %2821 = vst.msk [vmem:[%s4888_s15 + $0x1c8] sm:$0xff] %vm2763_vm1, %v2744_v7 }
 0x30d   : > { %v2747_v44 = vpop.xlane.xlu0 %2746 }
 0x30e   : > { %2822 = vst.msk [vmem:[%s4888_s15 + $0x1d0] sm:$0xff] %vm2763_vm1, %v2747_v44  ;;  %v2750_v8 = vpop.xlane.xlu1 %2749 }
 0x30f   : > { %2823 = vst.msk [vmem:[%s4888_s15 + $0x1d8] sm:$0xff] %vm2763_vm1, %v2750_v8 }
 0x311   : > { %v2753_v10 = vpop.xlane.xlu0 %2752 }
 0x312   : > { %2824 = vst.msk [vmem:[%s4888_s15 + $0x1e0] sm:$0xff] %vm2763_vm1, %v2753_v10  ;;  %v2756_v58 = vpop.xlane.xlu1 %2755 }
 0x313   : > { %2825 = vst.msk [vmem:[%s4888_s15 + $0x1e8] sm:$0xff] %vm2763_vm1, %v2756_v58 }
 0x315   : > { %v2759_v45 = vpop.xlane.xlu0 %2758 }
 0x316   : > { %2826 = vst.msk [vmem:[%s4888_s15 + $0x1f0] sm:$0xff] %vm2763_vm1, %v2759_v45  ;;  %v2762_v11 = vpop.xlane.xlu1 %2761 }
 0x317   : > { %2827 = vst.msk [vmem:[%s4888_s15 + $0x1f8] sm:$0xff] %vm2763_vm1, %v2762_v11 }
 0x318 PF: > { %s18_s27 = sadd.s32 1, %s4212_s27  }
 0x319   : > { %p15_p4 = scmp.ge.s32.totalorder %s18_s27, 4  }
 0x31b   :  { %17 = sbr.rel (!%p15_p4) target bundleno = 1 (0x1), region = 88 }

</bundles_post_ra>
